<compile_context>
chip_gen: v7x
topology: tpu7x:2x2x1
jax: 0.10.0
libtpu: 0.0.40
codegen_flags: <defaults>
</compile_context>

<pallas_src>
import functools

import jax
import jax.numpy as jnp
from jax.experimental import pallas as pl
from jax.experimental.pallas import tpu as pltpu


def _ffw_kernel(x_ref, scale_ref, bias_ref, w1_ref, b1_ref, w2_ref, b2_ref, o_ref):
    x = x_ref[...].astype(jnp.float32)                        # (TM, F)
    f = x.shape[-1]

    # mean-abs "layer norm"
    mean = jnp.mean(x, axis=-1, keepdims=True)
    x = x - mean
    denom = jnp.sum(jnp.abs(x), axis=-1, keepdims=True) * jnp.float32(1.0 / f)
    denom = denom + jnp.float32(1e-5)
    x = x * pl.reciprocal(denom, approx=True)                 # EUP vrcp slot
    x = x * scale_ref[...] + bias_ref[...]                    # affine (VPU, hidden under MXU)

    # linear_ff + ReLU — bf16 MXU operands, f32 accumulate
    xb = x.astype(jnp.bfloat16)
    h = jnp.dot(xb, w1_ref[...], preferred_element_type=jnp.float32) + b1_ref[...]
    h = jnp.maximum(h, 0.0).astype(jnp.bfloat16)              # halve hidden VMEM / feed GEMM2 at bf16 rate

    # linear_out
    y = jnp.dot(h, w2_ref[...], preferred_element_type=jnp.float32) + b2_ref[...]

    o_ref[...] = y.astype(o_ref.dtype)


def _round_up(v, m):
    return ((v + m - 1) // m) * m


@functools.partial(jax.jit, static_argnames=("tm", "vmem_limit_bytes"))
def conformer_ffw_quant(x, ln_scale, ln_bias, w1, b1, w2, b2, *,
                        tm=512, vmem_limit_bytes=48 * 1024 * 1024):
    """x: [B, T, F]; w1: [F, H] (bf16); w2: [H, F] (bf16); biases (1,H)/(1,F) f32."""
    b, t, f = x.shape
    h = w1.shape[1]
    rows = b * t
    x2 = x.reshape(rows, f)

    # Row tile: multiple of 8, no larger than the (rounded-up) row count, and
    # capped so there are at least 2 grid steps when possible (so the "parallel"
    # axis can shard across both v7x TensorCores).
    rows8 = _round_up(rows, 8)
    tm_eff = min(tm, rows8)
    if rows8 > 8:
        tm_eff = min(tm_eff, _round_up((rows + 1) // 2, 8))
    tm_eff = max(8, (tm_eff // 8) * 8)
    n_steps = pl.cdiv(rows, tm_eff)

    # Grid-invariant operands: single-buffered (constant index_map -> double
    # buffering would only waste VMEM, which matters on v7x's 64 MiB).
    inv = pl.Buffered(1)

    out = pl.pallas_call(
        _ffw_kernel,
        out_shape=jax.ShapeDtypeStruct((rows, f), x.dtype),
        grid_spec=pltpu.PrefetchScalarGridSpec(
            num_scalar_prefetch=0,
            grid=(n_steps,),
            in_specs=[
                pl.BlockSpec((tm_eff, f), lambda i: (i, 0)),                    # x rows (streamed)
                pl.BlockSpec((1, f), lambda i: (0, 0), pipeline_mode=inv),      # ln_scale
                pl.BlockSpec((1, f), lambda i: (0, 0), pipeline_mode=inv),      # ln_bias
                pl.BlockSpec((f, h), lambda i: (0, 0), pipeline_mode=inv),      # W1 (bf16)
                pl.BlockSpec((1, h), lambda i: (0, 0), pipeline_mode=inv),      # b1
                pl.BlockSpec((h, f), lambda i: (0, 0), pipeline_mode=inv),      # W2 (bf16)
                pl.BlockSpec((1, f), lambda i: (0, 0), pipeline_mode=inv),      # b2
            ],
            out_specs=pl.BlockSpec((tm_eff, f), lambda i: (i, 0)),
        ),
        compiler_params=pltpu.CompilerParams(
            dimension_semantics=("parallel",),
            vmem_limit_bytes=vmem_limit_bytes,
        ),
    )(x2, ln_scale, ln_bias, w1, b1, w2, b2)

    return out.reshape(b, t, f)


def _fake_quant_weight_sym_int8(w):
    """Symmetric per-tensor fake-quant of a weight matrix (approximates LinearQuant)."""
    qmax = 127.0
    scale = jnp.maximum(jnp.max(jnp.abs(w)), 1e-8) / qmax
    wq = jnp.clip(jnp.round(w / scale), -qmax - 1, qmax)
    return wq * scale


if __name__ == "__main__":
    # Small shapes consistent with the module: [B, T, F], hidden H.
    # F=256 keeps the output lane-dense and fills the 256-wide v6e/v7x MXU;
    # T=25 exercises the partial trailing block (rows=50, tm_eff=32 -> 2 steps).
    B, T, F, H = 2, 25, 256, 1024
    key = jax.random.PRNGKey(0)
    kx, kw1, kb1, kw2, kb2, ks, kb = jax.random.split(key, 7)

    x = jax.random.normal(kx, (B, T, F), dtype=jnp.float32)

    # Deterministic parameter init (nn.Linear-style uniform bounds).
    bound1 = 1.0 / jnp.sqrt(F)
    w1 = jax.random.uniform(kw1, (F, H), minval=-bound1, maxval=bound1, dtype=jnp.float32)
    b1 = jax.random.uniform(kb1, (1, H), minval=-bound1, maxval=bound1, dtype=jnp.float32)
    bound2 = 1.0 / jnp.sqrt(H)
    w2 = jax.random.uniform(kw2, (H, F), minval=-bound2, maxval=bound2, dtype=jnp.float32)
    b2 = jax.random.uniform(kb2, (1, F), minval=-bound2, maxval=bound2, dtype=jnp.float32)

    # LayerNorm-style scale/bias (module inits to ones/zeros; use non-trivial
    # values so the in-kernel affine is actually exercised).
    ln_scale = (1.0 + 0.1 * jax.random.normal(ks, (1, F))).astype(jnp.float32)
    ln_bias = (0.1 * jax.random.normal(kb, (1, F))).astype(jnp.float32)

    # Weight-QAT fake-quant, then store dequantized values as bf16 for the MXU
    # (portable across v5e/v6e/v7x; see int8 TODO above).
    w1_bf16 = _fake_quant_weight_sym_int8(w1).astype(jnp.bfloat16)
    w2_bf16 = _fake_quant_weight_sym_int8(w2).astype(jnp.bfloat16)

    y = conformer_ffw_quant(x, ln_scale, ln_bias, w1_bf16, b1, w2_bf16, b2, tm=512)
    jax.block_until_ready(y)

    # Pure-JAX reference with the same bf16 GEMM operand precision (f32 accum),
    # matching the kernel's numerics (the only residual differences are the
    # approx reciprocal and MXU accumulation order).
    def ref(xin):
        t = xin - jnp.mean(xin, axis=-1, keepdims=True)
        t = t / (jnp.sum(jnp.abs(t), axis=-1, keepdims=True) / xin.shape[-1] + 1e-5)
        t = t * ln_scale.reshape(F) + ln_bias.reshape(F)
        hdn = jnp.dot(t.astype(jnp.bfloat16), w1_bf16,
                      preferred_element_type=jnp.float32) + b1.reshape(H)
        hdn = jnp.maximum(hdn, 0.0).astype(jnp.bfloat16)
        return jnp.dot(hdn, w2_bf16, preferred_element_type=jnp.float32) + b2.reshape(F)

    y_ref = ref(x)
    assert jnp.allclose(y, y_ref, atol=2e-2, rtol=2e-2), \
        float(jnp.max(jnp.abs(y - y_ref)))
    print("KERNEL_OK")
</pallas_src>

<mosaic_0001>
module attributes {stable_mosaic.version = 11 : i64} {
  func.func @_ffw_kernel(%arg0: i32, %arg1: memref<32x256xf32, #tpu.memory_space<vmem>>, %arg2: memref<1x256xf32, #tpu.memory_space<vmem>>, %arg3: memref<1x256xf32, #tpu.memory_space<vmem>>, %arg4: memref<256x1024xbf16, #tpu.memory_space<vmem>>, %arg5: memref<1x1024xf32, #tpu.memory_space<vmem>>, %arg6: memref<1024x256xbf16, #tpu.memory_space<vmem>>, %arg7: memref<1x256xf32, #tpu.memory_space<vmem>>, %arg8: memref<32x256xf32, #tpu.memory_space<vmem>>) attributes {dimension_semantics = [#tpu.dimension_semantics<parallel>], iteration_bounds = array<i64: 2>, scalar_prefetch = 0 : i64, scratch_operands = 0 : i64, tpu.core_type = #tpu.core_type<tc>, window_params = [{transform_indices = @transform_0, window_bounds = array<i64: 32, 256>}, {pipeline_mode = #tpu.pipeline_mode<synchronous>, transform_indices = @transform_1, window_bounds = array<i64: 1, 256>}, {pipeline_mode = #tpu.pipeline_mode<synchronous>, transform_indices = @transform_2, window_bounds = array<i64: 1, 256>}, {pipeline_mode = #tpu.pipeline_mode<synchronous>, transform_indices = @transform_3, window_bounds = array<i64: 256, 1024>}, {pipeline_mode = #tpu.pipeline_mode<synchronous>, transform_indices = @transform_4, window_bounds = array<i64: 1, 1024>}, {pipeline_mode = #tpu.pipeline_mode<synchronous>, transform_indices = @transform_5, window_bounds = array<i64: 1024, 256>}, {pipeline_mode = #tpu.pipeline_mode<synchronous>, transform_indices = @transform_6, window_bounds = array<i64: 1, 256>}, {transform_indices = @transform_7, window_bounds = array<i64: 32, 256>}]} {
    %c0 = arith.constant 0 : index
    %c0_0 = arith.constant 0 : index
    %0 = vector.load %arg1[%c0, %c0_0] : memref<32x256xf32, #tpu.memory_space<vmem>>, vector<32x256xf32>
    %cst = arith.constant dense<0.000000e+00> : vector<32xf32>
    %1 = vector.multi_reduction <add>, %0, %cst [1] : vector<32x256xf32> to vector<32xf32>
    %2 = vector.shape_cast %1 : vector<32xf32> to vector<32x1xf32>
    %cst_1 = arith.constant 2.560000e+02 : f32
    %3 = vector.broadcast %cst_1 : f32 to vector<32x1xf32>
    %4 = arith.divf %2, %3 : vector<32x1xf32>
    %5 = vector.broadcast %4 : vector<32x1xf32> to vector<32x256xf32>
    %6 = arith.subf %0, %5 : vector<32x256xf32>
    %7 = math.absf %6 : vector<32x256xf32>
    %cst_2 = arith.constant dense<0.000000e+00> : vector<32xf32>
    %8 = vector.multi_reduction <add>, %7, %cst_2 [1] : vector<32x256xf32> to vector<32xf32>
    %9 = vector.shape_cast %8 : vector<32xf32> to vector<32x1xf32>
    %cst_3 = arith.constant 3.906250e-03 : f32
    %10 = vector.broadcast %cst_3 : f32 to vector<32x1xf32>
    %11 = arith.mulf %9, %10 : vector<32x1xf32>
    %cst_4 = arith.constant 9.99999974E-6 : f32
    %12 = vector.broadcast %cst_4 : f32 to vector<32x1xf32>
    %13 = arith.addf %11, %12 : vector<32x1xf32>
    %14 = tpu.reciprocal %13 {approx = true} : vector<32x1xf32> -> vector<32x1xf32>
    %15 = vector.broadcast %14 : vector<32x1xf32> to vector<32x256xf32>
    %16 = arith.mulf %6, %15 : vector<32x256xf32>
    %c0_5 = arith.constant 0 : index
    %c0_6 = arith.constant 0 : index
    %17 = vector.load %arg2[%c0_5, %c0_6] : memref<1x256xf32, #tpu.memory_space<vmem>>, vector<1x256xf32>
    %18 = vector.broadcast %17 : vector<1x256xf32> to vector<32x256xf32>
    %19 = arith.mulf %16, %18 : vector<32x256xf32>
    %c0_7 = arith.constant 0 : index
    %c0_8 = arith.constant 0 : index
    %20 = vector.load %arg3[%c0_7, %c0_8] : memref<1x256xf32, #tpu.memory_space<vmem>>, vector<1x256xf32>
    %21 = vector.broadcast %20 : vector<1x256xf32> to vector<32x256xf32>
    %22 = arith.addf %19, %21 : vector<32x256xf32>
    %23 = arith.truncf %22 : vector<32x256xf32> to vector<32x256xbf16>
    %c0_9 = arith.constant 0 : index
    %c0_10 = arith.constant 0 : index
    %24 = vector.load %arg4[%c0_9, %c0_10] : memref<256x1024xbf16, #tpu.memory_space<vmem>>, vector<256x1024xbf16>
    %cst_11 = arith.constant dense<0.000000e+00> : vector<32x1024xf32>
    %25 = tpu.matmul %23, %24, %cst_11 {dimension_numbers = #tpu.dot_dimension_numbers<[1], [0], [0], [1], [0, 0, 1, 1], [], []>} : vector<32x256xbf16>, vector<256x1024xbf16>, vector<32x1024xf32> -> vector<32x1024xf32>
    %c0_12 = arith.constant 0 : index
    %c0_13 = arith.constant 0 : index
    %26 = vector.load %arg5[%c0_12, %c0_13] : memref<1x1024xf32, #tpu.memory_space<vmem>>, vector<1x1024xf32>
    %27 = vector.broadcast %26 : vector<1x1024xf32> to vector<32x1024xf32>
    %28 = arith.addf %25, %27 : vector<32x1024xf32>
    %cst_14 = arith.constant 0.000000e+00 : f32
    %29 = vector.broadcast %cst_14 : f32 to vector<32x1024xf32>
    %30 = arith.maximumf %28, %29 : vector<32x1024xf32>
    %31 = arith.truncf %30 : vector<32x1024xf32> to vector<32x1024xbf16>
    %c0_15 = arith.constant 0 : index
    %c0_16 = arith.constant 0 : index
    %32 = vector.load %arg6[%c0_15, %c0_16] : memref<1024x256xbf16, #tpu.memory_space<vmem>>, vector<1024x256xbf16>
    %cst_17 = arith.constant dense<0.000000e+00> : vector<32x256xf32>
    %33 = tpu.matmul %31, %32, %cst_17 {dimension_numbers = #tpu.dot_dimension_numbers<[1], [0], [0], [1], [0, 0, 1, 1], [], []>} : vector<32x1024xbf16>, vector<1024x256xbf16>, vector<32x256xf32> -> vector<32x256xf32>
    %c0_18 = arith.constant 0 : index
    %c0_19 = arith.constant 0 : index
    %34 = vector.load %arg7[%c0_18, %c0_19] : memref<1x256xf32, #tpu.memory_space<vmem>>, vector<1x256xf32>
    %35 = vector.broadcast %34 : vector<1x256xf32> to vector<32x256xf32>
    %36 = arith.addf %33, %35 : vector<32x256xf32>
    %c0_20 = arith.constant 0 : index
    %c0_21 = arith.constant 0 : index
    %37 = vector.load %arg8[%c0_20, %c0_21] : memref<32x256xf32, #tpu.memory_space<vmem>>, vector<32x256xf32>
    tpu.vector_store %arg8[%c0_20, %c0_21], %36 {strides = array<i32>} : memref<32x256xf32, #tpu.memory_space<vmem>>, vector<32x256xf32>,
    return
  }
  func.func @transform_0(%arg0: i32) -> (i32, i32) {
    %c0_i32 = arith.constant 0 : i32
    %c0_i32_0 = arith.constant 0 : i32
    return %arg0, %c0_i32 : i32, i32
  }
  func.func @transform_1(%arg0: i32) -> (i32, i32) {
    %c0_i32 = arith.constant 0 : i32
    %c0_i32_0 = arith.constant 0 : i32
    %c0_i32_1 = arith.constant 0 : i32
    return %c0_i32, %c0_i32_0 : i32, i32
  }
  func.func @transform_2(%arg0: i32) -> (i32, i32) {
    %c0_i32 = arith.constant 0 : i32
    %c0_i32_0 = arith.constant 0 : i32
    %c0_i32_1 = arith.constant 0 : i32
    return %c0_i32, %c0_i32_0 : i32, i32
  }
  func.func @transform_3(%arg0: i32) -> (i32, i32) {
    %c0_i32 = arith.constant 0 : i32
    %c0_i32_0 = arith.constant 0 : i32
    %c0_i32_1 = arith.constant 0 : i32
    return %c0_i32, %c0_i32_0 : i32, i32
  }
  func.func @transform_4(%arg0: i32) -> (i32, i32) {
    %c0_i32 = arith.constant 0 : i32
    %c0_i32_0 = arith.constant 0 : i32
    %c0_i32_1 = arith.constant 0 : i32
    return %c0_i32, %c0_i32_0 : i32, i32
  }
  func.func @transform_5(%arg0: i32) -> (i32, i32) {
    %c0_i32 = arith.constant 0 : i32
    %c0_i32_0 = arith.constant 0 : i32
    %c0_i32_1 = arith.constant 0 : i32
    return %c0_i32, %c0_i32_0 : i32, i32
  }
  func.func @transform_6(%arg0: i32) -> (i32, i32) {
    %c0_i32 = arith.constant 0 : i32
    %c0_i32_0 = arith.constant 0 : i32
    %c0_i32_1 = arith.constant 0 : i32
    return %c0_i32, %c0_i32_0 : i32, i32
  }
  func.func @transform_7(%arg0: i32) -> (i32, i32) {
    %c0_i32 = arith.constant 0 : i32
    %c0_i32_0 = arith.constant 0 : i32
    return %arg0, %c0_i32 : i32, i32
  }
}

</mosaic_0001>

<bundles_post_ra>
// kernel: conformer_ffw_quant.1
= control target key start
LH: loop header
LB: loop body
LE: loop exit
PB: predicated region body
PF: predicated region fallthrough
CT: control target
= control target key end

     0   :  { %12 = vsyncpa [#allocation3], 0  ;;  %s3884_s0 = inlined_call_operand.vmem [shape: f32[50,256], index: 0, kind: input, shape index: {}]   ;;  %s3885_s1 = inlined_call_operand.vmem [shape: f32[1,256], index: 1, kind: input, shape index: {}]   ;;  %s3886_s2 = inlined_call_operand.vmem [shape: f32[1,256], index: 2, kind: input, shape index: {}]   ;;  %s3887_s3 = inlined_call_operand.hbm [shape: bf16[256,1024], index: 3, kind: input, shape index: {}]   ;;  %s3888_s4 = inlined_call_operand.vmem [shape: f32[1,1024], index: 4, kind: input, shape index: {}]   ;;  %s3889_s5 = inlined_call_operand.hbm [shape: bf16[1024,256], index: 5, kind: input, shape index: {}]   ;;  %s3890_s6 = inlined_call_operand.vmem [shape: f32[1,256], index: 6, kind: input, shape index: {}]   ;;  %s3891_s7 = inlined_call_operand.vmem [shape: f32[50,256], index: 7, kind: output, shape index: {}]  }
   0x1   :  { %13 = vsyncpa [#allocation5], 0  ;;  %s3556_s24 = smov 0   ;;  %s3558_s25 = smov 0  }
   0x2   :  { %s3560_s26 = smov 0  }
   0x3 LB: > { %s3569_s27 = sadd.s32 4294967295, %s3476_s26   ;;  %s3571_s28 = sadd.s32 1, %s3476_s26   ;;  %s3476_s26 = sphi %s3560_s26, %s3908_s26   ;;  %s3472_s25 = sphi %s3558_s25, %s3907_s25   ;;  %s3468_s24 = sphi %s3556_s24, %s3906_s24  }
   0x4   : > { %s175_s29 = ssub.s32 %s3476_s26, %s3571_s28  ;;  %s178_s30 = sadd.s32 1, %s3472_s25 }
   0x5   : > { %p176_p0 = scmp.eq.s32.totalorder %s175_s29, 0  ;;  %p188_p1 = scmp.ne.s32.totalorder %s3472_s25, %s3468_s24 }
   0x6   : > { %p189_p2 = scmp.eq.s32.totalorder %s3569_s27, 1  ;;  %p2721_p3 = scmp.ge.s32.totalorder %s3476_s26, 1 }
   0x7   : > { %s3579_s8 = scalar_select %p176_p0, %s3472_s25, %s178_s30  }
   0x8   : > { %p3581_p4 = por %p189_p2, %p188_p1  ;;  %p202_p5 = scmp.lt.s32.totalorder %s3476_s26, 3 }
   0x9   : > { %p3892_p6 = scmp.eq.s32.totalorder %s3569_s27, 0  ;;  %s3510_s11 = smov [#allocation2]  }
   0xa   : > { %s3894_s9 = scalar_select %p3581_p4, 1, 0 }
   0xb   : > { %p3586_p7 = pnand %p2721_p3, %p202_p5  ;;  %s220_s12 = sshll.u32 %s3510_s11, 4  ;;  %s221_s12 = int_to_ptr.vmem [resolvable:$true] %s220_s12 }
   0xc   : > { %s3511_s14 = smov [#allocation4]   ;;  %s3358_s18 = scalar_lea.hbm %s3887_s3, 16384 }
   0xd   : > { %s3895_s10 = scalar_select %p3586_p7, 1, 0 }
   0xe   : > { %p3053_p8 = pneg %p3586_p7  ;;  %s236_s15 = sshll.u32 %s3511_s14, 4  ;;  %s3598_s15 = int_to_ptr.vmem [resolvable:$true] %s236_s15 }
   0xf   : > { %p3359_p10 = scmp.ne.s32.totalorder %s3887_s3, %s3358_s18  ;;  %p3365_p0 = scmp.lt.u32.totalorder %s3358_s18, %s3887_s3 }
  0x10   : > { %p3594_p9 = pnand %p3892_p6, %p3053_p8 }
  0x12   : > { %p3360_p11 = pneg %p3594_p9 }
  0x14   : > { %p3361_p12 = pnand %p3360_p11, %p3359_p10 }
  0x16   : > { %p3362_p13 = pneg %p3361_p12 }
  0x18   : > { %p3367_p1 = pnand %p3365_p0, %p3362_p13 }
  0x1a   : > { %3370 = shalt.err (!%p3367_p1)
}
  0x1b   : > { %s3371_s23 = scalar_lea.vmem %s221_s12, 16384  ;;  %p3379_p8 = scmp.lt.s32.totalorder %s221_s12, %s221_s12 }
  0x1c   : > { %p3372_p2 = scmp.ne.s32.totalorder %s221_s12, %s3371_s23  ;;  %p3380_p6 = scmp.lt.s32.totalorder %s3371_s23, %s3371_s23 }
  0x1e   : > { %p3374_p3 = pnand %p3372_p2, %p3360_p11  ;;  %p3381_p4 = por %p3380_p6, %p3379_p8 }
  0x20   : > { %p3375_p5 = pneg %p3374_p3 }
  0x22   : > { %p3382_p7 = pnand %p3381_p4, %p3375_p5 }
  0x24   : > { %3385 = shalt.err (!%p3382_p7)
}
  0x25   : > { %s3512_s26 = smov 512   ;;  %s3513_s29 = smov 32  }
  0x26   : > { %3056 = dma.hbm_to_vmem [thread:$0]  (!%p3594_p9), %s3887_s3, 16384, %s221_s12, [#allocation3], %s3512_s26, %s3512_s26, %s3513_s29  }
  0x27   : > { %s3386_s17 = scalar_lea.hbm %s3889_s5, 16384 }
  0x28   : > { %p3387_p10 = scmp.ne.s32.totalorder %s3889_s5, %s3386_s17  ;;  %p3393_p7 = scmp.lt.u32.totalorder %s3386_s17, %s3889_s5 }
  0x2a   : > { %p3389_p4 = pnand %p3387_p10, %p3360_p11 }
  0x2c   : > { %p3390_p6 = pneg %p3389_p4 }
  0x2e   : > { %p3395_p12 = pnand %p3393_p7, %p3390_p6 }
  0x30   : > { %3398 = shalt.err (!%p3395_p12)
}
  0x31   : > { %s3399_s12 = scalar_lea.vmem %s3598_s15, 16384  ;;  %p3407_p2 = scmp.lt.s32.totalorder %s3598_s15, %s3598_s15 }
  0x32   : > { %p3400_p13 = scmp.ne.s32.totalorder %s3598_s15, %s3399_s12  ;;  %p3408_p3 = scmp.lt.s32.totalorder %s3399_s12, %s3399_s12 }
  0x34   : > { %p3402_p0 = pnand %p3400_p13, %p3360_p11  ;;  %p3409_p5 = por %p3408_p3, %p3407_p2 }
  0x36   : > { %p3403_p1 = pneg %p3402_p0 }
  0x38   : > { %p3410_p8 = pnand %p3409_p5, %p3403_p1 }
  0x3a   : > { %3413 = shalt.err (!%p3410_p8)
}
  0x3b   : > { %s3514_s22 = smov 128   ;;  %s3515_s23 = smov 8  }
  0x3c   : > { %3059 = dma.hbm_to_vmem [thread:$0]  (!%p3594_p9), %s3889_s5, 16384, %s3598_s15, [#allocation5], %s3514_s22, %s3514_s22, %s3515_s23  }
  0x3d   : > { %p3897_p10 = scmp.ne.s32.totalorder %s3895_s10, 0 }
  0x3e   : > { %p3898_p11 = scmp.eq.s32.totalorder (!%p3897_p10), %s3569_s27, 0 }
  0x3f   : > { %275 = sbr.rel (%p3897_p10) target bundleno = 1094 (0x446), region = 48 }
  0x46   : > { %3459 = dma.done.wait (%p3898_p11), [#allocation3], 16384   ;;  %p3899_p4 = pmov %p3898_p11 }
  0x48   : > { %3461 = vsyncadd (%p3899_p4), [#allocation3], 4294950912  ;;  %p3900_p6 = pmov %p3899_p4 }
  0x49   : > { %p3901_p7 = pmov %p3899_p4 }
  0x4a   : > { %3463 = dma.done.wait (%p3900_p6), [#allocation5], 16384  }
  0x4b   : > { %3465 = vsyncadd (%p3901_p7), [#allocation5], 4294950912  ;;  %s3658_s13 = sshll.u32 %s3569_s27, 2  ;;  %v456_v12 = vld [vmem:[#allocation2] sm:$0xff]  ;;  %s313_s12 = sand.u32 1, %s3468_s24  }
  0x4c   : > { %p322_p9 = scmp.lt.s32.totalorder %s3658_s13, 6  ;;  %v460_v13 = vld [vmem:[#allocation2 + $0x20] sm:$0xff]  ;;  %s2728_s26 = sshll.u32 %s313_s12, 6 }
  0x4d   : > { %v464_v14 = vld [vmem:[#allocation2 + $0x40] sm:$0xff]  ;;  %v2733_v15 = vcombine.high %v456_v12, %v460_v13  ;;  %v2732_v16 = vcombine.low %v456_v12, %v460_v13  ;;  %s3809_s29 = scalar_lea.vmem [#allocation6], %s2728_s26   ;;  %p3902_p12 = scmp.ne.s32.totalorder %s3894_s9, 0 }
  0x4e   : > { %s323_s10 = scalar_select %p322_p9, %s3658_s13, 6  ;;  %v468_v17 = vld [vmem:[#allocation2 + $0x60] sm:$0xff] }
  0x4f   : > { %v2741_v18 = vcombine.high %v464_v14, %v468_v17  ;;  %v472_v19 = vld [vmem:[#allocation2 + $0x80] sm:$0xff]  ;;  %1266 = vmatprep.subr.bf16.mxu1 %v2733_v15  ;;  %v2740_v21 = vcombine.low %v464_v14, %v468_v17  ;;  %s2534_s24 = ssub.s32 (%p3902_p12), 7, %s3658_s13 }
  0x50   : > { %s3007_s15 = sshll.u32 %s323_s10, 4  ;;  %v476_v20 = vld [vmem:[#allocation2 + $0xa0] sm:$0xff]  ;;  %1267 = vmatpush1.bf16.msra.mxu1 %v2732_v16  ;;  %s3010_s10 = sshll.u32 (%p3902_p12), %s3569_s27, 6 }
  0x51   : > { %s326_s14 = scalar_lea.vmem %s3884_s0, %s3007_s15  ;;  %1268 = vmatprep.subr.bf16.mxu1 %v2741_v18  ;;  %v2749_v22 = vcombine.high %v472_v19, %v476_v20  ;;  %v480_v23 = vld [vmem:[#allocation2 + $0xc0] sm:$0xff]  ;;  %v2748_v25 = vcombine.low %v472_v19, %v476_v20  ;;  %p2535_p13 = scmp.lt.s32.totalorder (%p3902_p12), %s2534_s24, 4 }
  0x52   : > { %v3665_v0 = vld [vmem:[%s326_s14] sm:$0xff]  ;;  %v3667_v1 = vld [vmem:[%s326_s14 + $0x8] sm:$0xff]  ;;  %v3675_v5 = vld [vmem:[%s326_s14 + $0x10] sm:$0xff]  ;;  %s3826_s11 = scalar_lea.vmem (%p3902_p12), %s3891_s7, %s3010_s10  }
  0x53   : > { %v3669_v2 = vld [vmem:[%s326_s14 + $0x20] sm:$0xff]  ;;  %v347_v3 = vadd.f32 %v3667_v1, %v3665_v0  ;;  %v3673_v4 = vld [vmem:[%s326_s14 + $0x28] sm:$0xff]  ;;  %v3677_v6 = vld [vmem:[%s326_s14 + $0x18] sm:$0xff] }
  0x54   : > { %v353_v7 = vadd.f32 %v3673_v4, %v3669_v2  ;;  %v3681_v8 = vld [vmem:[%s326_s14 + $0x30] sm:$0xff]  ;;  %v3683_v9 = vld [vmem:[%s326_s14 + $0x38] sm:$0xff]  ;;  %v350_v10 = vadd.f32 %v3677_v6, %v3675_v5  ;;  %v484_v24 = vld [vmem:[#allocation2 + $0xe0] sm:$0xff]  ;;  %1269 = vmatpush1.bf16.msra.mxu1 %v2740_v21 }
  0x55   : > { %348 = vadd.xlane.f32.xlu0 %v347_v3  ;;  %v356_v11 = vadd.f32 %v3683_v9, %v3681_v8  ;;  %v488_v26 = vld [vmem:[#allocation2 + $0x100] sm:$0xff]  ;;  %1270 = vmatprep.subr.bf16.mxu1 %v2749_v22  ;;  %v2757_v28 = vcombine.high %v480_v23, %v484_v24  ;;  %v2756_v29 = vcombine.low %v480_v23, %v484_v24 }
  0x56   : > { %354 = vadd.xlane.f32.xlu1 %v353_v7  ;;  %v492_v27 = vld [vmem:[#allocation2 + $0x120] sm:$0xff] }
  0x57   : > { %v496_v30 = vld [vmem:[#allocation2 + $0x140] sm:$0xff]  ;;  %v2765_v32 = vcombine.high %v488_v26, %v492_v27  ;;  %v2764_v33 = vcombine.low %v488_v26, %v492_v27 }
  0x58   : > { %1271 = vmatpush1.bf16.msra.mxu1 %v2748_v25  ;;  %v500_v31 = vld [vmem:[#allocation2 + $0x160] sm:$0xff] }
  0x59   : > { %351 = vadd.xlane.f32.xlu0 %v350_v10  ;;  %1272 = vmatprep.subr.bf16.mxu1 %v2757_v28  ;;  %v504_v34 = vld [vmem:[#allocation2 + $0x180] sm:$0xff]  ;;  %v2773_v36 = vcombine.high %v496_v30, %v500_v31  ;;  %v2772_v37 = vcombine.low %v496_v30, %v500_v31 }
  0x5a   : > { %357 = vadd.xlane.f32.xlu1 %v356_v11  ;;  %v508_v35 = vld [vmem:[#allocation2 + $0x1a0] sm:$0xff] }
  0x5b   : > { %v2781_v38 = vcombine.high %v504_v34, %v508_v35  ;;  %v512_v39 = vld [vmem:[#allocation2 + $0x1c0] sm:$0xff]  ;;  %v2780_v41 = vcombine.low %v504_v34, %v508_v35 }
  0x5c   : > { %1273 = vmatpush1.bf16.msra.mxu1 %v2756_v29  ;;  %v516_v40 = vld [vmem:[#allocation2 + $0x1e0] sm:$0xff] }
  0x5d   : > { %1274 = vmatprep.subr.bf16.mxu1 %v2765_v32  ;;  %v2789_v42 = vcombine.high %v512_v39, %v516_v40  ;;  %v520_v43 = vld [vmem:[#allocation2 + $0x200] sm:$0xff]  ;;  %v2788_v45 = vcombine.low %v512_v39, %v516_v40  ;;  %v3721_v40 = vld [vmem:[#allocation2 + $0x8] sm:$0xff] }
  0x5e   : > { %v524_v44 = vld [vmem:[#allocation2 + $0x220] sm:$0xff] }
  0x5f   : > { %v2797_v46 = vcombine.high %v520_v43, %v524_v44  ;;  %v528_v47 = vld [vmem:[#allocation2 + $0x240] sm:$0xff]  ;;  %v2796_v49 = vcombine.low %v520_v43, %v524_v44 }
  0x60   : > { %1275 = vmatpush1.bf16.msra.mxu1 %v2764_v33  ;;  %v532_v48 = vld [vmem:[#allocation2 + $0x260] sm:$0xff] }
  0x61   : > { %1276 = vmatprep.subr.bf16.mxu1 %v2773_v36  ;;  %v2805_v50 = vcombine.high %v528_v47, %v532_v48  ;;  %v536_v17 = vld [vmem:[#allocation2 + $0x280] sm:$0xff] }
  0x62   : > { %v544_v20 = vld [vmem:[#allocation2 + $0x2c0] sm:$0xff] }
  0x63   : > { %v548_v21 = vld [vmem:[#allocation2 + $0x2e0] sm:$0xff] }
  0x64   : > { %1277 = vmatpush1.bf16.msra.mxu1 %v2772_v37  ;;  %v2821_v22 = vcombine.high %v544_v20, %v548_v21  ;;  %v2820_v23 = vcombine.low %v544_v20, %v548_v21  ;;  %v552_v24 = vld [vmem:[#allocation2 + $0x300] sm:$0xff] }
  0x65   : > { %1278 = vmatprep.subr.bf16.mxu1 %v2781_v38  ;;  %v556_v25 = vld [vmem:[#allocation2 + $0x320] sm:$0xff] }
  0x66   : > { %v2829_v26 = vcombine.high %v552_v24, %v556_v25  ;;  %v2828_v27 = vcombine.low %v552_v24, %v556_v25  ;;  %v560_v28 = vld [vmem:[#allocation2 + $0x340] sm:$0xff] }
  0x67   : > { %v564_v29 = vld [vmem:[#allocation2 + $0x360] sm:$0xff] }
  0x68   : > { %1279 = vmatpush1.bf16.msra.mxu1 %v2780_v41  ;;  %v2837_v30 = vcombine.high %v560_v28, %v564_v29  ;;  %v2836_v31 = vcombine.low %v560_v28, %v564_v29  ;;  %v568_v32 = vld [vmem:[#allocation2 + $0x380] sm:$0xff]  ;;  %v3723_v41 = vld [vmem:[#allocation2 + $0x28] sm:$0xff] }
  0x69   : > { %1280 = vmatprep.subr.bf16.mxu1 %v2789_v42  ;;  %v572_v33 = vld [vmem:[#allocation2 + $0x3a0] sm:$0xff]  ;;  %v2735_v42 = vcombine.high %v3721_v40, %v3723_v41  ;;  %v2734_v43 = vcombine.low %v3721_v40, %v3723_v41  ;;  %v465_v28 = vld [vmem:[#allocation2 + $0x48] sm:$0xff] }
  0x6a   : > { %v2845_v34 = vcombine.high %v568_v32, %v572_v33  ;;  %v2844_v35 = vcombine.low %v568_v32, %v572_v33  ;;  %v576_v36 = vld [vmem:[#allocation2 + $0x3c0] sm:$0xff]  ;;  %v469_v29 = vld [vmem:[#allocation2 + $0x68] sm:$0xff] }
  0x6b   : > { %v580_v37 = vld [vmem:[#allocation2 + $0x3e0] sm:$0xff]  ;;  %v493_v40 = vld [vmem:[#allocation2 + $0x128] sm:$0xff] }
  0x6c   : > { %1281 = vmatpush1.bf16.msra.mxu1 %v2788_v45  ;;  %v2853_v38 = vcombine.high %v576_v36, %v580_v37  ;;  %v2852_v39 = vcombine.low %v576_v36, %v580_v37  ;;  %v2742_v36 = vcombine.low %v465_v28, %v469_v29 }
  0x6d   : > { %1282 = vmatprep.subr.bf16.mxu1 %v2797_v46 }
  0x70   : > { %1283 = vmatpush1.bf16.msra.mxu1 %v2796_v49 }
  0x71   : > { %1284 = vmatprep.subr.bf16.mxu1 %v2805_v50 }
  0xe2   : > { %v349_v51 = vpop.xlane.xlu0 %348 }
  0xe3   : > { %v360_v52 = vmul.f32 0.00390625, %v349_v51  ;;  %v355_v53 = vpop.xlane.xlu1 %354 }
  0xe4   : > { %v362_v54 = vmul.f32 0.00390625, %v355_v53 }
  0xe5   : > { %v3690_v55 = vsub.f32 %v3665_v0, %v360_v52  ;;  %v3693_v56 = vsub.f32 %v3667_v1, %v360_v52 }
  0xe6   : > { %v3696_v57 = vsub.f32 %v3669_v2, %v362_v54  ;;  %v3699_v58 = vsub.f32 %v3673_v4, %v362_v54  ;;  %v352_v59 = vpop.xlane.xlu0 %351 }
  0xe7   : > { %v361_v60 = vmul.f32 0.00390625, %v352_v59  ;;  %v358_v61 = vpop.xlane.xlu1 %357  ;;  %v372_v62 = vand.u32 2147483647, %v3690_v55  ;;  %v373_v63 = vand.u32 2147483647, %v3693_v56 }
  0xe8   : > { %v363_v3 = vmul.f32 0.00390625, %v358_v61  ;;  %v376_v0 = vand.u32 2147483647, %v3696_v57  ;;  %v377_v7 = vand.u32 2147483647, %v3699_v58 }
  0xe9   : > { %v3706_v1 = vsub.f32 %v3675_v5, %v361_v60  ;;  %v3709_v2 = vsub.f32 %v3677_v6, %v361_v60  ;;  %v380_v4 = vadd.f32 %v373_v63, %v372_v62 }
  0xea   : > { %v3712_v10 = vsub.f32 %v3681_v8, %v363_v3  ;;  %v3715_v11 = vsub.f32 %v3683_v9, %v363_v3  ;;  %v386_v12 = vadd.f32 %v377_v7, %v376_v0  ;;  %v2804_v8 = vcombine.low %v528_v47, %v532_v48  ;;  %v540_v9 = vld [vmem:[#allocation2 + $0x2a0] sm:$0xff] }
  0xeb   : > { %381 = vadd.xlane.f32.xlu0 %v380_v4  ;;  %v374_v13 = vand.u32 2147483647, %v3706_v1  ;;  %v375_v14 = vand.u32 2147483647, %v3709_v2  ;;  %v2813_v18 = vcombine.high %v536_v17, %v540_v9  ;;  %v2812_v19 = vcombine.low %v536_v17, %v540_v9  ;;  %v412_v3 = vld [vmem:[%s3885_s1] sm:$0x3] }
  0xec   : > { %v378_v15 = vand.u32 2147483647, %v3712_v10  ;;  %v379_v5 = vand.u32 2147483647, %v3715_v11  ;;  %1285 = vmatpush1.bf16.msra.mxu1 %v2804_v8  ;;  %v414_v47 = vlaneseq }
  0xed   : > { %v383_v16 = vadd.f32 %v375_v14, %v374_v13  ;;  %1286 = vmatprep.subr.bf16.mxu1 %v2813_v18  ;;  %v432_v14 = vld [vmem:[%s3886_s2] sm:$0x3] }
  0xee   : > { %v389_v6 = vadd.f32 %v379_v5, %v378_v15  ;;  %v3729_v54 = vshrl.u32 %v414_v47, 7 }
  0xef   : > { %387 = vadd.xlane.f32.xlu0 %v386_v12  ;;  %384 = vadd.xlane.f32.xlu1 %v383_v16 }
  0xf0   : > { %1287 = vmatpush1.bf16.msra.mxu1 %v2812_v19  ;;  %v3732_v62 = vsub.s32 1, %v3729_v54  ;;  %v3735_v63 = vsub.s32 0, %v3729_v54 }
  0xf1   : > { %1288 = vmatprep.subr.bf16.mxu1 %v2821_v22 }
  0xf2   : > { %v421_v7 = vrot.slane %v412_v3, %v3732_v62  ;;  %v417_v4 = vrot.slane %v412_v3, %v3735_v63  ;;  %v441_v16 = vrot.slane %v432_v14, %v3732_v62  ;;  %v437_v8 = vrot.slane %v432_v14, %v3735_v63  ;;  %v513_v3 = vld [vmem:[#allocation2 + $0x1c8] sm:$0xff] }
  0xf3   : > { %390 = vadd.xlane.f32.xlu1 %v389_v6 }
  0xf4   : > { %1289 = vmatpush1.bf16.msra.mxu1 %v2820_v23 }
  0xf5   : > { %1290 = vmatprep.subr.bf16.mxu1 %v2829_v26 }
  0xf8   : > { %1291 = vmatpush1.bf16.msra.mxu1 %v2828_v27 }
  0xf9   : > { %1292 = vmatprep.subr.bf16.mxu1 %v2837_v30 }
  0xfc   : > { %1293 = vmatpush1.bf16.msra.mxu1 %v2836_v31  ;;  %v2743_v31 = vcombine.high %v465_v28, %v469_v29  ;;  %v553_v28 = vld [vmem:[#allocation2 + $0x308] sm:$0xff] }
  0xfd   : > { %1294 = vmatprep.subr.bf16.mxu1 %v2845_v34  ;;  %v557_v29 = vld [vmem:[#allocation2 + $0x328] sm:$0xff] }
 0x100   : > { %1295 = vmatpush1.bf16.msra.mxu1 %v2844_v35  ;;  %v477_v35 = vld [vmem:[#allocation2 + $0xa8] sm:$0xff] }
 0x101   : > { %1296 = vmatprep.subr.bf16.mxu1 %v2853_v38 }
 0x104   : > { %1297 = vmatpush1.bf16.msra.mxu1 %v2852_v39  ;;  %v481_v39 = vld [vmem:[#allocation2 + $0xc8] sm:$0xff] }
 0x105   : > { %1319 = vmatprep.subr.bf16.mxu1 %v2735_v42  ;;  %v485_v42 = vld [vmem:[#allocation2 + $0xe8] sm:$0xff] }
 0x106   : > { %v2759_v47 = vcombine.high %v481_v39, %v485_v42  ;;  %v2758_v41 = vcombine.low %v481_v39, %v485_v42  ;;  %v3173_v39 = vld [vmem:[#allocation4 + $0x54] ss:$8 sps:$4 sm:$0xff]  }
 0x178   : > { %v382_v44 = vpop.xlane.xlu0 %381 }
 0x179   : > { %v392_v45 = vmul.f32 0.00390625, %v382_v44 }
 0x17b   : > { %v396_v46 = vadd.f32 1e-05, %v392_v45 }
 0x17c   : > { %v385_v48 = vpop.xlane.xlu1 %384  ;;  %v388_v49 = vpop.xlane.xlu0 %387 }
 0x17d   : > { %3350 = vrcp.f32 %v396_v46  ;;  %v393_v50 = vmul.f32 0.00390625, %v385_v48  ;;  %v394_v51 = vmul.f32 0.00390625, %v388_v49  ;;  %v489_v48 = vld [vmem:[#allocation2 + $0x108] sm:$0xff] }
 0x17e   : > { %v497_v49 = vld [vmem:[#allocation2 + $0x148] sm:$0xff] }
 0x17f   : > { %v397_v52 = vadd.f32 1e-05, %v393_v50  ;;  %v398_v53 = vadd.f32 1e-05, %v394_v51  ;;  %v501_v50 = vld [vmem:[#allocation2 + $0x168] sm:$0xff]  ;;  %v2766_v51 = vcombine.low %v489_v48, %v493_v40 }
 0x180   : > { %v391_v59 = vpop.xlane.xlu1 %390 }
 0x181   : > { %3352 = vrcp.f32 %v397_v52  ;;  %v395_v60 = vmul.f32 0.00390625, %v391_v59  ;;  %v2775_v52 = vcombine.high %v497_v49, %v501_v50  ;;  %v509_v59 = vld [vmem:[#allocation2 + $0x1a8] sm:$0xff] }
 0x182   : > { %3354 = vrcp.f32 %v398_v53  ;;  %v505_v53 = vld [vmem:[#allocation2 + $0x188] sm:$0xff] }
 0x183   : > { %v399_v61 = vadd.f32 1e-05, %v395_v60  ;;  %v2774_v60 = vcombine.low %v497_v49, %v501_v50  ;;  %v458_v50 = vld [vmem:[#allocation2 + $0x10] sm:$0xff] }
 0x185   : > { %3356 = vrcp.f32 %v399_v61  ;;  %v2783_v61 = vcombine.high %v505_v53, %v509_v59 }
 0x187   : > { %v3351_v0 = vpop.eup %3350 }
 0x188   : > { %v404_v12 = vmul.f32 %v3351_v0, %v3690_v55  ;;  %v405_v13 = vmul.f32 %v3351_v0, %v3693_v56  ;;  %v517_v0 = vld [vmem:[#allocation2 + $0x1e8] sm:$0xff] }
 0x189   : > { %v2790_v14 = vcombine.low %v513_v3, %v517_v0 }
 0x18a   : > { %v425_v5 = vmul.f32 %v421_v7, %v405_v13  ;;  %v424_v6 = vmul.f32 %v417_v4, %v404_v12  ;;  %v521_v12 = vld [vmem:[#allocation2 + $0x208] sm:$0xff] }
 0x18b   : > { %v3353_v15 = vpop.eup %3352  ;;  %v525_v13 = vld [vmem:[#allocation2 + $0x228] sm:$0xff] }
 0x18c   : > { %v3355_v17 = vpop.eup %3354  ;;  %v406_v9 = vmul.f32 %v3353_v15, %v3706_v1  ;;  %v407_v18 = vmul.f32 %v3353_v15, %v3709_v2  ;;  %v445_v21 = vadd.f32 %v441_v16, %v425_v5  ;;  %v444_v22 = vadd.f32 %v437_v8, %v424_v6  ;;  %v529_v5 = vld [vmem:[#allocation2 + $0x248] sm:$0xff] }
 0x18d   : > { %v409_v55 = vmul.f32 %v3355_v17, %v3699_v58  ;;  %v408_v1 = vmul.f32 %v3355_v17, %v3696_v57  ;;  %v2799_v15 = vcombine.high %v521_v12, %v525_v13  ;;  %v3158_v6 = vld [vmem:[#allocation4 + $0x4] ss:$8 sps:$4 sm:$0xff]   ;;  %v3160_v17 = vld [vmem:[#allocation4] ss:$8 sps:$4 sm:$0xff]  }
 0x18e   : > { %v427_v19 = vmul.f32 %v421_v7, %v407_v18  ;;  %v426_v56 = vmul.f32 %v417_v4, %v406_v9  ;;  %2306 = vmatprep.subr.bf16.mxu0 %v3158_v6  ;;  %v537_v18 = vld [vmem:[#allocation2 + $0x288] sm:$0xff] }
 0x18f   : > { %v3357_v20 = vpop.eup %3356  ;;  %v429_v23 = vmul.f32 %v421_v7, %v409_v55  ;;  %v541_v55 = vld [vmem:[#allocation2 + $0x2a8] sm:$0xff]  ;;  %2307 = vmatpush1.bf16.msra.mxu0 %v3160_v17  ;;  %v482_v17 = vld [vmem:[#allocation2 + $0xd0] sm:$0xff] }
 0x190   : > { %v410_v24 = vmul.f32 %v3357_v20, %v3712_v10  ;;  %v411_v25 = vmul.f32 %v3357_v20, %v3715_v11  ;;  %v447_v26 = vadd.f32 %v441_v16, %v427_v19  ;;  %v446_v27 = vadd.f32 %v437_v8, %v426_v56  ;;  %v473_v10 = vld [vmem:[#allocation2 + $0x88] sm:$0xff]  ;;  %v3161_v19 = vld [vmem:[#allocation4 + $0x14] ss:$8 sps:$4 sm:$0xff]   ;;  %v3163_v20 = vld [vmem:[#allocation4 + $0x10] ss:$8 sps:$4 sm:$0xff]  }
 0x191   : > { %v449_v33 = vadd.f32 %v441_v16, %v429_v23  ;;  %v428_v11 = vmul.f32 %v417_v4, %v408_v1  ;;  %v2751_v37 = vcombine.high %v473_v10, %v477_v35  ;;  %v2750_v45 = vcombine.low %v473_v10, %v477_v35  ;;  %2308 = vmatprep.subr.bf16.mxu0 %v3161_v19  ;;  %v549_v23 = vld [vmem:[#allocation2 + $0x2e8] sm:$0xff]  ;;  %v3167_v1 = vld [vmem:[#allocation4 + $0x34] ss:$8 sps:$4 sm:$0xff]  }
 0x192   : > { %v3755_v30 = vpack.c.bf16 %v447_v26, %v445_v21  ;;  %v3757_v2 = vpack.c.bf16 %v446_v27, %v444_v22  ;;  %v431_v58 = vmul.f32 %v421_v7, %v411_v25  ;;  %v430_v32 = vmul.f32 %v417_v4, %v410_v24  ;;  %v545_v22 = vld [vmem:[#allocation2 + $0x2c8] sm:$0xff] }
 0x193   : > { %v448_v44 = vadd.f32 %v437_v8, %v428_v11  ;;  %v2782_v7 = vcombine.low %v505_v53, %v509_v59  ;;  %v2791_v4 = vcombine.high %v513_v3, %v517_v0  ;;  %v2815_v21 = vcombine.high %v537_v18, %v541_v55  ;;  %2309 = vmatpush1.bf16.msra.mxu0 %v3163_v20  ;;  %v3164_v24 = vld [vmem:[#allocation4 + $0x24] ss:$8 sps:$4 sm:$0xff]   ;;  %v3166_v26 = vld [vmem:[#allocation4 + $0x20] ss:$8 sps:$4 sm:$0xff]   ;;  %v3181_v59 = vld [vmem:[#allocation4 + $0x70] ss:$8 sps:$4 sm:$0xff]  }
 0x194   : > { %1298 = vmatprep.mubr.bf16.mxu1 %v3755_v30  ;;  %v451_v34 = vadd.f32 %v441_v16, %v431_v58  ;;  %v450_v38 = vadd.f32 %v437_v8, %v430_v32  ;;  %v533_v16 = vld [vmem:[#allocation2 + $0x268] sm:$0xff]  ;;  %v2798_v8 = vcombine.low %v521_v12, %v525_v13  ;;  %v2814_v25 = vcombine.low %v537_v18, %v541_v55  ;;  %v470_v3 = vld [vmem:[#allocation2 + $0x70] sm:$0xff] }
 0x195   : > { %1299 = vmatmul.mubr.bf16.vlgmr.msra.gmra.mrb[0].mxu1 %v3757_v2  ;;  %v2807_v9 = vcombine.high %v529_v5, %v533_v16  ;;  %v2806_v56 = vcombine.low %v529_v5, %v533_v16  ;;  %v2823_v27 = vcombine.high %v545_v22, %v549_v23  ;;  %2310 = vmatprep.subr.bf16.mxu0 %v3164_v24  ;;  %v3170_v10 = vld [vmem:[#allocation4 + $0x44] ss:$8 sps:$4 sm:$0xff]   ;;  %v3172_v11 = vld [vmem:[#allocation4 + $0x40] ss:$8 sps:$4 sm:$0xff]   ;;  %v474_v13 = vld [vmem:[#allocation2 + $0x90] sm:$0xff] }
 0x196   : > { %1320 = vmatpush1.bf16.msra.mxu1 %v2734_v43  ;;  %v3764_v57 = vpack.c.bf16 %v451_v34, %v449_v33  ;;  %v3767_v46 = vpack.c.bf16 %v450_v38, %v448_v44  ;;  %v2767_v43 = vcombine.high %v489_v48, %v493_v40  ;;  %v2822_v58 = vcombine.low %v545_v22, %v549_v23  ;;  %v561_v33 = vld [vmem:[#allocation2 + $0x348] sm:$0xff]  ;;  %v3175_v44 = vld [vmem:[#allocation4 + $0x50] ss:$8 sps:$4 sm:$0xff]  }
 0x197   : > { %1321 = vmatprep.subr.bf16.mxu1 %v2743_v31  ;;  %2311 = vmatpush1.bf16.msra.mxu0 %v3166_v26  ;;  %v3169_v31 = vld [vmem:[#allocation4 + $0x30] ss:$8 sps:$4 sm:$0xff]   ;;  %v2831_v32 = vcombine.high %v553_v28, %v557_v29  ;;  %v565_v34 = vld [vmem:[#allocation2 + $0x368] sm:$0xff]  ;;  %v2830_v35 = vcombine.low %v553_v28, %v557_v29  ;;  %v3197_v29 = vld [vmem:[#allocation4 + $0xd4] ss:$8 sps:$4 sm:$0xff]  }
 0x198   : > { %1308 = vmatprep.mubr.bf16.mxu1 %v3764_v57  ;;  %2312 = vmatprep.subr.bf16.mxu0 %v3167_v1  ;;  %v573_v38 = vld [vmem:[#allocation2 + $0x3a8] sm:$0xff]  ;;  %v2838_v42 = vcombine.low %v561_v33, %v565_v34  ;;  %v3187_v16 = vld [vmem:[#allocation4 + $0x90] ss:$8 sps:$4 sm:$0xff]  }
 0x199   : > { %v581_v48 = vld [vmem:[#allocation2 + $0x3e8] sm:$0xff]  ;;  %v494_v20 = vld [vmem:[#allocation2 + $0x130] sm:$0xff] }
 0x19a   : > { %1322 = vmatpush1.bf16.msra.mxu1 %v2742_v36  ;;  %v2839_v36 = vcombine.high %v561_v33, %v565_v34  ;;  %v3176_v40 = vld [vmem:[#allocation4 + $0x64] ss:$8 sps:$4 sm:$0xff]   ;;  %v3190_v18 = vld [vmem:[#allocation4 + $0xa0] ss:$8 sps:$4 sm:$0xff]   ;;  %v3193_v22 = vld [vmem:[#allocation4 + $0xb0] ss:$8 sps:$4 sm:$0xff]  }
 0x19b   : > { %1323 = vmatprep.subr.bf16.mxu1 %v2751_v37  ;;  %2313 = vmatpush1.bf16.msra.mxu0 %v3169_v31  ;;  %v569_v37 = vld [vmem:[#allocation2 + $0x388] sm:$0xff]  ;;  %v498_v26 = vld [vmem:[#allocation2 + $0x150] sm:$0xff] }
 0x19c   : > { %2314 = vmatprep.subr.bf16.mxu0 %v3170_v10  ;;  %v3182_v0 = vld [vmem:[#allocation4 + $0x84] ss:$8 sps:$4 sm:$0xff]   ;;  %v3196_v28 = vld [vmem:[#allocation4 + $0xc0] ss:$8 sps:$4 sm:$0xff]   ;;  %v506_v31 = vld [vmem:[#allocation2 + $0x190] sm:$0xff] }
 0x19d   : > { %1309 = vmatmul.mubr.bf16.gmra.mrb[4].mxu1 %v3767_v46  ;;  %v3188_v6 = vld [vmem:[#allocation4 + $0xa4] ss:$8 sps:$4 sm:$0xff]   ;;  %v3199_v33 = vld [vmem:[#allocation4 + $0xd0] ss:$8 sps:$4 sm:$0xff]  }
 0x19e   : > { %1324 = vmatpush1.bf16.msra.mxu1 %v2750_v45  ;;  %1351 = vmatprep.mubr.bf16.mxu1 %v3755_v30  ;;  %v2847_v45 = vcombine.high %v569_v37, %v573_v38  ;;  %v3194_v23 = vld [vmem:[#allocation4 + $0xc4] ss:$8 sps:$4 sm:$0xff]  }
 0x19f   : > { %1325 = vmatprep.subr.bf16.mxu1 %v2759_v47  ;;  %2315 = vmatpush1.bf16.msra.mxu0 %v3172_v11  ;;  %v577_v47 = vld [vmem:[#allocation2 + $0x3c8] sm:$0xff]  ;;  %v518_v11 = vld [vmem:[#allocation2 + $0x1f0] sm:$0xff] }
 0x1a0   : > { %2316 = vmatprep.subr.bf16.mxu0 %v3173_v39  ;;  %v2855_v49 = vcombine.high %v577_v47, %v581_v48  ;;  %v2854_v53 = vcombine.low %v577_v47, %v581_v48  ;;  %v3205_v48 = vld [vmem:[#allocation4 + $0xf0] ss:$8 sps:$4 sm:$0xff]  }
 0x1a2   : > { %1326 = vmatpush1.bf16.msra.mxu1 %v2758_v41  ;;  %v2846_v41 = vcombine.low %v569_v37, %v573_v38  ;;  %v3202_v38 = vld [vmem:[#allocation4 + $0xe0] ss:$8 sps:$4 sm:$0xff]  }
 0x1a3   : > { %1327 = vmatprep.subr.bf16.mxu1 %v2767_v43  ;;  %2317 = vmatpush1.bf16.msra.mxu0 %v3175_v44  ;;  %v3178_v43 = vld [vmem:[#allocation4 + $0x60] ss:$8 sps:$4 sm:$0xff]   ;;  %v526_v44 = vld [vmem:[#allocation2 + $0x230] sm:$0xff] }
 0x1a4   : > { %2318 = vmatprep.subr.bf16.mxu0 %v3176_v40 }
 0x1a6   : > { %1328 = vmatpush1.bf16.msra.mxu1 %v2766_v51  ;;  %v462_v51 = vld [vmem:[#allocation2 + $0x30] sm:$0xff] }
 0x1a7   : > { %1329 = vmatprep.subr.bf16.mxu1 %v2775_v52  ;;  %2319 = vmatpush1.bf16.msra.mxu0 %v3178_v43  ;;  %v3179_v52 = vld [vmem:[#allocation4 + $0x74] ss:$8 sps:$4 sm:$0xff]  }
 0x1a8   : > { %2320 = vmatprep.subr.bf16.mxu0 %v3179_v52  ;;  %v534_v43 = vld [vmem:[#allocation2 + $0x270] sm:$0xff] }
 0x1a9   : > { %v538_v52 = vld [vmem:[#allocation2 + $0x290] sm:$0xff] }
 0x1aa   : > { %1330 = vmatpush1.bf16.msra.mxu1 %v2774_v60  ;;  %v2737_v60 = vcombine.high %v458_v50, %v462_v51 }
 0x1ab   : > { %1331 = vmatprep.subr.bf16.mxu1 %v2783_v61  ;;  %v466_v61 = vld [vmem:[#allocation2 + $0x50] sm:$0xff]  ;;  %2321 = vmatpush1.bf16.msra.mxu0 %v3181_v59 }
 0x1ac   : > { %v2745_v12 = vcombine.high %v466_v61, %v470_v3  ;;  %2322 = vmatprep.subr.bf16.mxu0 %v3182_v0  ;;  %v2744_v5 = vcombine.low %v466_v61, %v470_v3  ;;  %v546_v61 = vld [vmem:[#allocation2 + $0x2d0] sm:$0xff] }
 0x1ad   : > { %v550_v3 = vld [vmem:[#allocation2 + $0x2f0] sm:$0xff] }
 0x1ae   : > { %1332 = vmatpush1.bf16.msra.mxu1 %v2782_v7  ;;  %v2736_v7 = vcombine.low %v458_v50, %v462_v51 }
 0x1af   : > { %1333 = vmatprep.subr.bf16.mxu1 %v2791_v4  ;;  %v3184_v4 = vld [vmem:[#allocation4 + $0x80] ss:$8 sps:$4 sm:$0xff]  }
 0x1b0   : > { %2323 = vmatpush1.bf16.msra.mxu0 %v3184_v4  ;;  %v554_v4 = vld [vmem:[#allocation2 + $0x310] sm:$0xff] }
 0x1b2   : > { %1334 = vmatpush1.bf16.msra.mxu1 %v2790_v14  ;;  %v478_v14 = vld [vmem:[#allocation2 + $0xb0] sm:$0xff] }
 0x1b3   : > { %1335 = vmatprep.subr.bf16.mxu1 %v2799_v15  ;;  %v3185_v15 = vld [vmem:[#allocation4 + $0x94] ss:$8 sps:$4 sm:$0xff]   ;;  %v2752_v55 = vcombine.low %v474_v13, %v478_v14 }
 0x1b4   : > { %2324 = vmatprep.subr.bf16.mxu0 %v3185_v15  ;;  %v562_v15 = vld [vmem:[#allocation2 + $0x350] sm:$0xff] }
 0x1b5   : > { %2325 = vmatpush1.bf16.msra.mxu0 %v3187_v16 }
 0x1b6   : > { %1336 = vmatpush1.bf16.msra.mxu1 %v2798_v8  ;;  %v2753_v8 = vcombine.high %v474_v13, %v478_v14  ;;  %2326 = vmatprep.subr.bf16.mxu0 %v3188_v6  ;;  %v2824_v13 = vcombine.low %v546_v61, %v550_v3 }
 0x1b7   : > { %1337 = vmatprep.subr.bf16.mxu1 %v2807_v9  ;;  %v486_v9 = vld [vmem:[#allocation2 + $0xf0] sm:$0xff] }
 0x1b8   : > { %v2761_v19 = vcombine.high %v482_v17, %v486_v9  ;;  %v2760_v24 = vcombine.low %v482_v17, %v486_v9  ;;  %v574_v17 = vld [vmem:[#allocation2 + $0x3b0] sm:$0xff] }
 0x1b9   : > { %2327 = vmatpush1.bf16.msra.mxu0 %v3190_v18 }
 0x1ba   : > { %1338 = vmatpush1.bf16.msra.mxu1 %v2806_v56  ;;  %v490_v56 = vld [vmem:[#allocation2 + $0x110] sm:$0xff] }
 0x1bb   : > { %1339 = vmatprep.subr.bf16.mxu1 %v2815_v21  ;;  %v3191_v21 = vld [vmem:[#allocation4 + $0xb4] ss:$8 sps:$4 sm:$0xff]   ;;  %v2768_v1 = vcombine.low %v490_v56, %v494_v20 }
 0x1bc   : > { %2328 = vmatprep.subr.bf16.mxu0 %v3191_v21  ;;  %v459_v21 = vld [vmem:[#allocation2 + $0x18] sm:$0xff] }
 0x1bd   : > { %2329 = vmatpush1.bf16.msra.mxu0 %v3193_v22  ;;  %v463_v22 = vld [vmem:[#allocation2 + $0x38] sm:$0xff] }
 0x1be   : > { %1340 = vmatpush1.bf16.msra.mxu1 %v2814_v25  ;;  %v2769_v25 = vcombine.high %v490_v56, %v494_v20  ;;  %2330 = vmatprep.subr.bf16.mxu0 %v3194_v23 }
 0x1bf   : > { %1341 = vmatprep.subr.bf16.mxu1 %v2823_v27  ;;  %v502_v27 = vld [vmem:[#allocation2 + $0x170] sm:$0xff] }
 0x1c0   : > { %v2776_v34 = vcombine.low %v498_v26, %v502_v27 }
 0x1c1   : > { %2331 = vmatpush1.bf16.msra.mxu0 %v3196_v28 }
 0x1c2   : > { %1342 = vmatpush1.bf16.msra.mxu1 %v2822_v58  ;;  %v2777_v58 = vcombine.high %v498_v26, %v502_v27  ;;  %2332 = vmatprep.subr.bf16.mxu0 %v3197_v29  ;;  %v471_v26 = vld [vmem:[#allocation2 + $0x78] sm:$0xff]  ;;  %v2738_v27 = vcombine.low %v459_v21, %v463_v22 }
 0x1c3   : > { %1343 = vmatprep.subr.bf16.mxu1 %v2831_v32  ;;  %v510_v32 = vld [vmem:[#allocation2 + $0x1b0] sm:$0xff]  ;;  %v475_v29 = vld [vmem:[#allocation2 + $0x98] sm:$0xff] }
 0x1c4   : > { %v2785_v10 = vcombine.high %v506_v31, %v510_v32  ;;  %v2784_v37 = vcombine.low %v506_v31, %v510_v32  ;;  %v483_v32 = vld [vmem:[#allocation2 + $0xd8] sm:$0xff] }
 0x1c5   : > { %2333 = vmatpush1.bf16.msra.mxu0 %v3199_v33  ;;  %v487_v33 = vld [vmem:[#allocation2 + $0xf8] sm:$0xff] }
 0x1c6   : > { %1344 = vmatpush1.bf16.msra.mxu1 %v2830_v35  ;;  %v514_v35 = vld [vmem:[#allocation2 + $0x1d0] sm:$0xff] }
 0x1c7   : > { %1345 = vmatprep.subr.bf16.mxu1 %v2839_v36  ;;  %v3200_v36 = vld [vmem:[#allocation4 + $0xe4] ss:$8 sps:$4 sm:$0xff]   ;;  %v2793_v39 = vcombine.high %v514_v35, %v518_v11  ;;  %v2792_v47 = vcombine.low %v514_v35, %v518_v11  ;;  %v491_v35 = vld [vmem:[#allocation2 + $0x118] sm:$0xff] }
 0x1c8   : > { %2334 = vmatprep.subr.bf16.mxu0 %v3200_v36  ;;  %v495_v11 = vld [vmem:[#allocation2 + $0x138] sm:$0xff]  ;;  %v2762_v36 = vcombine.low %v483_v32, %v487_v33 }
 0x1c9   : > { %2335 = vmatpush1.bf16.msra.mxu0 %v3202_v38  ;;  %v499_v38 = vld [vmem:[#allocation2 + $0x158] sm:$0xff] }
 0x1ca   : > { %1346 = vmatpush1.bf16.msra.mxu1 %v2838_v42  ;;  %v522_v42 = vld [vmem:[#allocation2 + $0x210] sm:$0xff] }
 0x1cb   : > { %1347 = vmatprep.subr.bf16.mxu1 %v2847_v45  ;;  %v3203_v45 = vld [vmem:[#allocation4 + $0xf4] ss:$8 sps:$4 sm:$0xff]   ;;  %v2801_v40 = vcombine.high %v522_v42, %v526_v44  ;;  %v2800_v50 = vcombine.low %v522_v42, %v526_v44  ;;  %v2770_v42 = vcombine.low %v491_v35, %v495_v11 }
 0x1cc   : > { %2336 = vmatprep.subr.bf16.mxu0 %v3203_v45  ;;  %v507_v45 = vld [vmem:[#allocation2 + $0x198] sm:$0xff] }
 0x1cd   : > { %2337 = vmatpush1.bf16.msra.mxu0 %v3205_v48 }
 0x1ce   : > { %1348 = vmatpush1.bf16.msra.mxu1 %v2846_v41  ;;  %v530_v41 = vld [vmem:[#allocation2 + $0x250] sm:$0xff] }
 0x1cf   : > { %1349 = vmatprep.subr.bf16.mxu1 %v2855_v49  ;;  %v3208_v49 = vld [vmem:[#allocation4 + $0x104] ss:$8 sps:$4 sm:$0xff]   ;;  %v2809_v51 = vcombine.high %v530_v41, %v534_v43  ;;  %v2808_v59 = vcombine.low %v530_v41, %v534_v43  ;;  %v515_v41 = vld [vmem:[#allocation2 + $0x1d8] sm:$0xff] }
 0x1d0   : > { %2359 = vmatprep.subr.bf16.mxu0 %v3208_v49  ;;  %v519_v43 = vld [vmem:[#allocation2 + $0x1f8] sm:$0xff] }
 0x1d2   : > { %1350 = vmatpush1.bf16.msra.mxu1 %v2854_v53  ;;  %v542_v53 = vld [vmem:[#allocation2 + $0x2b0] sm:$0xff] }
 0x1d3   : > { %1372 = vmatprep.subr.bf16.mxu1 %v2737_v60  ;;  %v2817_v60 = vcombine.high %v538_v52, %v542_v53  ;;  %v2816_v0 = vcombine.low %v538_v52, %v542_v53  ;;  %v2794_v52 = vcombine.low %v515_v41, %v519_v43 }
 0x1d5   : > { %1352 = vmatmul.mubr.bf16.vlgmr.msra.gmra.mrb[8].mxu1 %v3757_v2 }
 0x1d6   : > { %1361 = vmatprep.mubr.bf16.mxu1 %v3764_v57  ;;  %1373 = vmatpush1.bf16.msra.mxu1 %v2736_v7  ;;  %v2825_v7 = vcombine.high %v546_v61, %v550_v3 }
 0x1d7   : > { %1374 = vmatprep.subr.bf16.mxu1 %v2745_v12  ;;  %v558_v12 = vld [vmem:[#allocation2 + $0x330] sm:$0xff] }
 0x1d8   : > { %v2833_v14 = vcombine.high %v554_v4, %v558_v12  ;;  %v2832_v16 = vcombine.low %v554_v4, %v558_v12 }
 0x1da   : > { %1375 = vmatpush1.bf16.msra.mxu1 %v2744_v5  ;;  %v566_v5 = vld [vmem:[#allocation2 + $0x370] sm:$0xff] }
 0x1db   : > { %1376 = vmatprep.subr.bf16.mxu1 %v2753_v8  ;;  %v2841_v6 = vcombine.high %v562_v15, %v566_v5  ;;  %v570_v8 = vld [vmem:[#allocation2 + $0x390] sm:$0xff]  ;;  %v2840_v9 = vcombine.low %v562_v15, %v566_v5 }
 0x1dc   : > { %v2849_v18 = vcombine.high %v570_v8, %v574_v17  ;;  %v2848_v56 = vcombine.low %v570_v8, %v574_v17 }
 0x1dd   : > { %1362 = vmatmul.mubr.bf16.gmra.mrb[12].mxu1 %v3767_v46 }
 0x1de   : > { %1377 = vmatpush1.bf16.msra.mxu1 %v2752_v55  ;;  %1404 = vmatprep.mubr.bf16.mxu1 %v3755_v30  ;;  %v578_v55 = vld [vmem:[#allocation2 + $0x3d0] sm:$0xff] }
 0x1df   : > { %1378 = vmatprep.subr.bf16.mxu1 %v2761_v19  ;;  %v582_v19 = vld [vmem:[#allocation2 + $0x3f0] sm:$0xff] }
 0x1e0   : > { %v2857_v20 = vcombine.high %v578_v55, %v582_v19  ;;  %v2856_v23 = vcombine.low %v578_v55, %v582_v19 }
 0x1e2   : > { %1379 = vmatpush1.bf16.msra.mxu1 %v2760_v24  ;;  %v2739_v24 = vcombine.high %v459_v21, %v463_v22 }
 0x1e3   : > { %1380 = vmatprep.subr.bf16.mxu1 %v2769_v25  ;;  %v467_v25 = vld [vmem:[#allocation2 + $0x58] sm:$0xff] }
 0x1e4   : > { %v2747_v28 = vcombine.high %v467_v25, %v471_v26 }
 0x1e6   : > { %1381 = vmatpush1.bf16.msra.mxu1 %v2768_v1  ;;  %v479_v1 = vld [vmem:[#allocation2 + $0xb8] sm:$0xff] }
 0x1e7   : > { %1382 = vmatprep.subr.bf16.mxu1 %v2777_v58  ;;  %v2746_v58 = vcombine.low %v467_v25, %v471_v26  ;;  %v2755_v31 = vcombine.high %v475_v29, %v479_v1 }
 0x1ea   : > { %1383 = vmatpush1.bf16.msra.mxu1 %v2776_v34  ;;  %v2754_v34 = vcombine.low %v475_v29, %v479_v1 }
 0x1eb   : > { %1384 = vmatprep.subr.bf16.mxu1 %v2785_v10  ;;  %v2763_v10 = vcombine.high %v483_v32, %v487_v33 }
 0x1ee   : > { %1385 = vmatpush1.bf16.msra.mxu1 %v2784_v37  ;;  %v2771_v37 = vcombine.high %v491_v35, %v495_v11 }
 0x1ef   : > { %1386 = vmatprep.subr.bf16.mxu1 %v2793_v39  ;;  %v503_v39 = vld [vmem:[#allocation2 + $0x178] sm:$0xff] }
 0x1f0   : > { %v2779_v44 = vcombine.high %v499_v38, %v503_v39  ;;  %v2778_v48 = vcombine.low %v499_v38, %v503_v39 }
 0x1f2   : > { %1387 = vmatpush1.bf16.msra.mxu1 %v2792_v47  ;;  %v511_v47 = vld [vmem:[#allocation2 + $0x1b8] sm:$0xff] }
 0x1f3   : > { %1388 = vmatprep.subr.bf16.mxu1 %v2801_v40  ;;  %v2787_v40 = vcombine.high %v507_v45, %v511_v47  ;;  %v2786_v49 = vcombine.low %v507_v45, %v511_v47  ;;  %v3211_v47 = vld [vmem:[#allocation4 + $0x114] ss:$8 sps:$4 sm:$0xff]  }
 0x1f6   : > { %1389 = vmatpush1.bf16.msra.mxu1 %v2800_v50  ;;  %v523_v50 = vld [vmem:[#allocation2 + $0x218] sm:$0xff] }
 0x1f7   : > { %1390 = vmatprep.subr.bf16.mxu1 %v2809_v51  ;;  %v527_v51 = vld [vmem:[#allocation2 + $0x238] sm:$0xff] }
 0x1f8   : > { %v2803_v53 = vcombine.high %v523_v50, %v527_v51  ;;  %v2802_v61 = vcombine.low %v523_v50, %v527_v51 }
 0x1fa   : > { %1391 = vmatpush1.bf16.msra.mxu1 %v2808_v59  ;;  %v531_v59 = vld [vmem:[#allocation2 + $0x258] sm:$0xff] }
 0x1fb   : > { %1392 = vmatprep.subr.bf16.mxu1 %v2817_v60  ;;  %v535_v60 = vld [vmem:[#allocation2 + $0x278] sm:$0xff] }
 0x1fc   : > { %v2811_v3 = vcombine.high %v531_v59, %v535_v60  ;;  %v2810_v4 = vcombine.low %v531_v59, %v535_v60 }
 0x1fe   : > { %1393 = vmatpush1.bf16.msra.mxu1 %v2816_v0  ;;  %v539_v0 = vld [vmem:[#allocation2 + $0x298] sm:$0xff] }
 0x1ff   : > { %1394 = vmatprep.subr.bf16.mxu1 %v2825_v7  ;;  %v543_v7 = vld [vmem:[#allocation2 + $0x2b8] sm:$0xff] }
 0x200   : > { %v2819_v12 = vcombine.high %v539_v0, %v543_v7  ;;  %v2818_v15 = vcombine.low %v539_v0, %v543_v7  ;;  %v3217_v0 = vld [vmem:[#allocation4 + $0x134] ss:$8 sps:$4 sm:$0xff]   ;;  %v3215_v7 = vld [vmem:[#allocation4 + $0x130] ss:$8 sps:$4 sm:$0xff]  }
 0x202   : > { %1395 = vmatpush1.bf16.msra.mxu1 %v2824_v13  ;;  %v547_v13 = vld [vmem:[#allocation2 + $0x2d8] sm:$0xff] }
 0x203   : > { %1396 = vmatprep.subr.bf16.mxu1 %v2833_v14  ;;  %v551_v14 = vld [vmem:[#allocation2 + $0x2f8] sm:$0xff] }
 0x204   : > { %v2827_v5 = vcombine.high %v547_v13, %v551_v14  ;;  %v2826_v8 = vcombine.low %v547_v13, %v551_v14  ;;  %v3223_v13 = vld [vmem:[#allocation4 + $0x154] ss:$8 sps:$4 sm:$0xff]   ;;  %v3221_v14 = vld [vmem:[#allocation4 + $0x150] ss:$8 sps:$4 sm:$0xff]  }
 0x206   : > { %1397 = vmatpush1.bf16.msra.mxu1 %v2832_v16  ;;  %v555_v16 = vld [vmem:[#allocation2 + $0x318] sm:$0xff] }
 0x207   : > { %1398 = vmatprep.subr.bf16.mxu1 %v2841_v6  ;;  %v559_v6 = vld [vmem:[#allocation2 + $0x338] sm:$0xff] }
 0x208   : > { %v2835_v17 = vcombine.high %v555_v16, %v559_v6  ;;  %v2834_v55 = vcombine.low %v555_v16, %v559_v6  ;;  %v3229_v16 = vld [vmem:[#allocation4 + $0x174] ss:$8 sps:$4 sm:$0xff]   ;;  %v3227_v6 = vld [vmem:[#allocation4 + $0x170] ss:$8 sps:$4 sm:$0xff]  }
 0x20a   : > { %1399 = vmatpush1.bf16.msra.mxu1 %v2840_v9  ;;  %v563_v9 = vld [vmem:[#allocation2 + $0x358] sm:$0xff] }
 0x20b   : > { %1400 = vmatprep.subr.bf16.mxu1 %v2849_v18  ;;  %v567_v18 = vld [vmem:[#allocation2 + $0x378] sm:$0xff] }
 0x20c   : > { %v2843_v19 = vcombine.high %v563_v9, %v567_v18  ;;  %v2842_v21 = vcombine.low %v563_v9, %v567_v18  ;;  %v3235_v9 = vld [vmem:[#allocation4 + $0x194] ss:$8 sps:$4 sm:$0xff]   ;;  %v3233_v18 = vld [vmem:[#allocation4 + $0x190] ss:$8 sps:$4 sm:$0xff]  }
 0x20e   : > { %1401 = vmatpush1.bf16.msra.mxu1 %v2848_v56  ;;  %v571_v56 = vld [vmem:[#allocation2 + $0x398] sm:$0xff] }
 0x20f   : > { %1402 = vmatprep.subr.bf16.mxu1 %v2857_v20  ;;  %v575_v20 = vld [vmem:[#allocation2 + $0x3b8] sm:$0xff] }
 0x210   : > { %v2851_v22 = vcombine.high %v571_v56, %v575_v20  ;;  %v2850_v25 = vcombine.low %v571_v56, %v575_v20  ;;  %v3241_v56 = vld [vmem:[#allocation4 + $0x1b4] ss:$8 sps:$4 sm:$0xff]   ;;  %v3239_v20 = vld [vmem:[#allocation4 + $0x1b0] ss:$8 sps:$4 sm:$0xff]  }
 0x212   : > { %1403 = vmatpush1.bf16.msra.mxu1 %v2856_v23  ;;  %v579_v23 = vld [vmem:[#allocation2 + $0x3d8] sm:$0xff] }
 0x213   : > { %1425 = vmatprep.subr.bf16.mxu1 %v2739_v24  ;;  %v583_v24 = vld [vmem:[#allocation2 + $0x3f8] sm:$0xff] }
 0x214   : > { %v2859_v26 = vcombine.high %v579_v23, %v583_v24 }
 0x215   : > { %1405 = vmatmul.mubr.bf16.vlgmr.msra.gmra.mrb[16].mxu1 %v3757_v2 }
 0x216   : > { %1414 = vmatprep.mubr.bf16.mxu1 %v3764_v57  ;;  %1426 = vmatpush1.bf16.msra.mxu1 %v2738_v27  ;;  %v2858_v27 = vcombine.low %v579_v23, %v583_v24  ;;  %v3247_v23 = vld [vmem:[#allocation4 + $0x1d4] ss:$8 sps:$4 sm:$0xff]   ;;  %v596_v24 = vsub.s32 2, %v3729_v54 }
 0x217   : > { %1427 = vmatprep.subr.bf16.mxu1 %v2747_v28  ;;  %v3785_v28 = vld [vmem:[%s3888_s4] sm:$0xff] }
 0x218   : > { %v589_v29 = vrot.slane %v3785_v28, %v3735_v63  ;;  %v593_v1 = vrot.slane %v3785_v28, %v3732_v62 }
 0x21a   : > { %1428 = vmatpush1.bf16.msra.mxu1 %v2746_v58 }
 0x21b   : > { %1429 = vmatprep.subr.bf16.mxu1 %v2755_v31 }
 0x21d   : > { %1415 = vmatmul.mubr.bf16.gmra.mrb[20].mxu1 %v3767_v46 }
 0x21e   : > { %1430 = vmatpush1.bf16.msra.mxu1 %v2754_v34  ;;  %1457 = vmatprep.mubr.bf16.mxu1 %v3755_v30  ;;  %v2795_v30 = vcombine.high %v515_v41, %v519_v43 }
 0x21f   : > { %1431 = vmatprep.subr.bf16.mxu1 %v2763_v10 }
 0x222   : > { %1432 = vmatpush1.bf16.msra.mxu1 %v2762_v36 }
 0x223   : > { %1433 = vmatprep.subr.bf16.mxu1 %v2771_v37 }
 0x226   : > { %1434 = vmatpush1.bf16.msra.mxu1 %v2770_v42  ;;  %v3206_v42 = vld [vmem:[#allocation4 + $0x100] ss:$8 sps:$4 sm:$0xff]  }
 0x227   : > { %1435 = vmatprep.subr.bf16.mxu1 %v2779_v44 }
 0x22a   : > { %1436 = vmatpush1.bf16.msra.mxu1 %v2778_v48 }
 0x22b   : > { %1437 = vmatprep.subr.bf16.mxu1 %v2787_v40 }
 0x22e   : > { %1438 = vmatpush1.bf16.msra.mxu1 %v2786_v49 }
 0x22f   : > { %1439 = vmatprep.subr.bf16.mxu1 %v2795_v30  ;;  %v3209_v30 = vld [vmem:[#allocation4 + $0x110] ss:$8 sps:$4 sm:$0xff]  }
 0x232   : > { %1440 = vmatpush1.bf16.msra.mxu1 %v2794_v52  ;;  %v3214_v52 = vld [vmem:[#allocation4 + $0x124] ss:$8 sps:$4 sm:$0xff]  }
 0x233   : > { %1441 = vmatprep.subr.bf16.mxu1 %v2803_v53 }
 0x236   : > { %1442 = vmatpush1.bf16.msra.mxu1 %v2802_v61 }
 0x237   : > { %1443 = vmatprep.subr.bf16.mxu1 %v2811_v3  ;;  %v3212_v3 = vld [vmem:[#allocation4 + $0x120] ss:$8 sps:$4 sm:$0xff]  }
 0x23a   : > { %1444 = vmatpush1.bf16.msra.mxu1 %v2810_v4  ;;  %v3220_v4 = vld [vmem:[#allocation4 + $0x144] ss:$8 sps:$4 sm:$0xff]  }
 0x23b   : > { %1445 = vmatprep.subr.bf16.mxu1 %v2819_v12  ;;  %v3218_v12 = vld [vmem:[#allocation4 + $0x140] ss:$8 sps:$4 sm:$0xff]  }
 0x23e   : > { %1446 = vmatpush1.bf16.msra.mxu1 %v2818_v15  ;;  %v3226_v15 = vld [vmem:[#allocation4 + $0x164] ss:$8 sps:$4 sm:$0xff]  }
 0x23f   : > { %1447 = vmatprep.subr.bf16.mxu1 %v2827_v5  ;;  %v3224_v5 = vld [vmem:[#allocation4 + $0x160] ss:$8 sps:$4 sm:$0xff]  }
 0x242   : > { %1448 = vmatpush1.bf16.msra.mxu1 %v2826_v8  ;;  %v3232_v8 = vld [vmem:[#allocation4 + $0x184] ss:$8 sps:$4 sm:$0xff]  }
 0x243   : > { %1449 = vmatprep.subr.bf16.mxu1 %v2835_v17  ;;  %v3230_v17 = vld [vmem:[#allocation4 + $0x180] ss:$8 sps:$4 sm:$0xff]  }
 0x246   : > { %1450 = vmatpush1.bf16.msra.mxu1 %v2834_v55  ;;  %v3238_v55 = vld [vmem:[#allocation4 + $0x1a4] ss:$8 sps:$4 sm:$0xff]  }
 0x247   : > { %1451 = vmatprep.subr.bf16.mxu1 %v2843_v19  ;;  %v3236_v19 = vld [vmem:[#allocation4 + $0x1a0] ss:$8 sps:$4 sm:$0xff]  }
 0x24a   : > { %1452 = vmatpush1.bf16.msra.mxu1 %v2842_v21  ;;  %v3244_v21 = vld [vmem:[#allocation4 + $0x1c4] ss:$8 sps:$4 sm:$0xff]  }
 0x24b   : > { %1453 = vmatprep.subr.bf16.mxu1 %v2851_v22  ;;  %v3242_v22 = vld [vmem:[#allocation4 + $0x1c0] ss:$8 sps:$4 sm:$0xff]  }
 0x24e   : > { %1454 = vmatpush1.bf16.msra.mxu1 %v2850_v25  ;;  %v600_v25 = vsub.s32 3, %v3729_v54 }
 0x24f   : > { %1455 = vmatprep.subr.bf16.mxu1 %v2859_v26  ;;  %v3245_v26 = vld [vmem:[#allocation4 + $0x1d0] ss:$8 sps:$4 sm:$0xff]  }
 0x252   : > { %1456 = vmatpush1.bf16.msra.mxu1 %v2858_v27  ;;  %v597_v27 = vrot.slane %v3785_v28, %v596_v24  ;;  %v3287_v24 = vld [vmem:[#allocation4 + $0x2b0] ss:$8 sps:$4 sm:$0xff]  }
 0x255   : > { %1458 = vmatmul.mubr.bf16.vlgmr.msra.gmra.mrb[24].mxu1 %v3757_v2 }
 0x256   : > { %1467 = vmatprep.mubr.bf16.mxu1 %v3764_v57 }
 0x25d   : > { %1468 = vmatmul.mubr.bf16.gmra.mrb[28].mxu1 %v3767_v46 }
 0x268   : > { %v1300_v58 = vpop.f32.mrb[0].mxu1 }
 0x269   : > { %v1301_v31 = vadd.f32 %v1300_v58, %v589_v29  ;;  %v1302_v32 = vpop.f32.mrb[1].mxu1 }
 0x26a   : > { %v1303_v33 = vadd.f32 %v1302_v32, %v593_v1  ;;  %v1304_v2 = vpop.f32.mrb[2].mxu1 }
 0x26b   : > { %v1305_v34 = vadd.f32 %v1304_v2, %v589_v29  ;;  %v1306_v57 = vpop.f32.mrb[3].mxu1  ;;  %v1478_v46 = vmax.f32 %v1301_v31, 0.0  ;;  %v3248_v31 = vld [vmem:[#allocation4 + $0x1e0] ss:$8 sps:$4 sm:$0xff]   ;;  %v3253_v2 = vld [vmem:[#allocation4 + $0x1f4] ss:$8 sps:$4 sm:$0xff]  }
 0x26c   : > { %v1307_v10 = vadd.f32 %v1306_v57, %v593_v1  ;;  %v1479_v11 = vmax.f32 %v1303_v33, 0.0 }
 0x26d   : > { %v1486_v35 = vmax.f32 %v1305_v34, 0.0 }
 0x26e   : > { %v1487_v36 = vmax.f32 %v1307_v10, 0.0 }
 0x26f   : > { %v1510_v37 = vpack.c.bf16 %v1486_v35, %v1478_v46 }
 0x270   : > { %v1310_v38 = vpop.f32.mrb[4].mxu1  ;;  %v1511_v39 = vpack.c.bf16 %v1487_v36, %v1479_v11  ;;  %v3251_v11 = vld [vmem:[#allocation4 + $0x1f0] ss:$8 sps:$4 sm:$0xff]  }
 0x271   : > { %v1311_v44 = vadd.f32 %v1310_v38, %v589_v29  ;;  %v1312_v45 = vpop.f32.mrb[5].mxu1  ;;  %v3256_v38 = vld [vmem:[#allocation4 + $0x204] ss:$8 sps:$4 sm:$0xff]  }
 0x272   : > { %v1313_v48 = vadd.f32 %v1312_v45, %v593_v1  ;;  %v1314_v40 = vpop.f32.mrb[6].mxu1  ;;  %2338 = vmatprep.mubr.bf16.mxu0 %v1511_v39 }
 0x273   : > { %v1315_v41 = vadd.f32 %v1314_v40, %v589_v29  ;;  %v1316_v43 = vpop.f32.mrb[7].mxu1  ;;  %2339 = vmatmul.mubr.bf16.vlgmr.msra.gmra.mrb[0].mxu0 %v1510_v37  ;;  %v1494_v50 = vmax.f32 %v1311_v44, 0.0  ;;  %v3250_v29 = vld [vmem:[#allocation4 + $0x1e4] ss:$8 sps:$4 sm:$0xff]  }
 0x274   : > { %v1317_v49 = vadd.f32 %v1316_v43, %v593_v1  ;;  %2360 = vmatpush1.bf16.msra.mxu0 %v3206_v42  ;;  %v1495_v53 = vmax.f32 %v1313_v48, 0.0  ;;  %v601_v1 = vrot.slane %v3785_v28, %v600_v25  ;;  %v3254_v48 = vld [vmem:[#allocation4 + $0x200] ss:$8 sps:$4 sm:$0xff]   ;;  %v3259_v43 = vld [vmem:[#allocation4 + $0x214] ss:$8 sps:$4 sm:$0xff]  }
 0x275   : > { %v1502_v51 = vmax.f32 %v1315_v41, 0.0  ;;  %2361 = vmatprep.subr.bf16.mxu0 %v3211_v47  ;;  %v3292_v25 = vld [vmem:[#allocation4 + $0x2c4] ss:$8 sps:$4 sm:$0xff]  }
 0x276   : > { %v1503_v59 = vmax.f32 %v1317_v49, 0.0 }
 0x277   : > { %v1518_v60 = vpack.c.bf16 %v1502_v51, %v1494_v50 }
 0x278   : > { %v1519_v61 = vpack.c.bf16 %v1503_v59, %v1495_v53  ;;  %2362 = vmatpush1.bf16.msra.mxu0 %v3209_v30  ;;  %v3257_v53 = vld [vmem:[#allocation4 + $0x210] ss:$8 sps:$4 sm:$0xff]  }
 0x279   : > { %2363 = vmatprep.subr.bf16.mxu0 %v3214_v52 }
 0x27a   : > { %2348 = vmatprep.mubr.bf16.mxu0 %v1519_v61  ;;  %v3262_v61 = vld [vmem:[#allocation4 + $0x224] ss:$8 sps:$4 sm:$0xff]  }
 0x27b   : > { %2349 = vmatmul.mubr.bf16.gmra.mrb[4].mxu0 %v1518_v60 }
 0x27c   : > { %2364 = vmatpush1.bf16.msra.mxu0 %v3212_v3 }
 0x27d   : > { %2365 = vmatprep.subr.bf16.mxu0 %v3217_v0 }
 0x280   : > { %2366 = vmatpush1.bf16.msra.mxu0 %v3215_v7 }
 0x281   : > { %2367 = vmatprep.subr.bf16.mxu0 %v3220_v4 }
 0x284   : > { %2368 = vmatpush1.bf16.msra.mxu0 %v3218_v12  ;;  %v3260_v12 = vld [vmem:[#allocation4 + $0x220] ss:$8 sps:$4 sm:$0xff]  }
 0x285   : > { %2369 = vmatprep.subr.bf16.mxu0 %v3223_v13  ;;  %v3265_v13 = vld [vmem:[#allocation4 + $0x234] ss:$8 sps:$4 sm:$0xff]  }
 0x288   : > { %2370 = vmatpush1.bf16.msra.mxu0 %v3221_v14  ;;  %v3263_v14 = vld [vmem:[#allocation4 + $0x230] ss:$8 sps:$4 sm:$0xff]  }
 0x289   : > { %2371 = vmatprep.subr.bf16.mxu0 %v3226_v15  ;;  %v3268_v15 = vld [vmem:[#allocation4 + $0x244] ss:$8 sps:$4 sm:$0xff]  }
 0x28c   : > { %2372 = vmatpush1.bf16.msra.mxu0 %v3224_v5  ;;  %v3266_v5 = vld [vmem:[#allocation4 + $0x240] ss:$8 sps:$4 sm:$0xff]  }
 0x28d   : > { %2373 = vmatprep.subr.bf16.mxu0 %v3229_v16  ;;  %v3271_v16 = vld [vmem:[#allocation4 + $0x254] ss:$8 sps:$4 sm:$0xff]  }
 0x290   : > { %2374 = vmatpush1.bf16.msra.mxu0 %v3227_v6  ;;  %v3269_v6 = vld [vmem:[#allocation4 + $0x250] ss:$8 sps:$4 sm:$0xff]  }
 0x291   : > { %2375 = vmatprep.subr.bf16.mxu0 %v3232_v8  ;;  %v3274_v8 = vld [vmem:[#allocation4 + $0x264] ss:$8 sps:$4 sm:$0xff]  }
 0x294   : > { %2376 = vmatpush1.bf16.msra.mxu0 %v3230_v17  ;;  %v3272_v17 = vld [vmem:[#allocation4 + $0x260] ss:$8 sps:$4 sm:$0xff]  }
 0x295   : > { %2377 = vmatprep.subr.bf16.mxu0 %v3235_v9  ;;  %v3277_v9 = vld [vmem:[#allocation4 + $0x274] ss:$8 sps:$4 sm:$0xff]  }
 0x298   : > { %2378 = vmatpush1.bf16.msra.mxu0 %v3233_v18  ;;  %v3275_v18 = vld [vmem:[#allocation4 + $0x270] ss:$8 sps:$4 sm:$0xff]  }
 0x299   : > { %2379 = vmatprep.subr.bf16.mxu0 %v3238_v55  ;;  %v3280_v55 = vld [vmem:[#allocation4 + $0x284] ss:$8 sps:$4 sm:$0xff]  }
 0x29c   : > { %2380 = vmatpush1.bf16.msra.mxu0 %v3236_v19  ;;  %v3278_v19 = vld [vmem:[#allocation4 + $0x280] ss:$8 sps:$4 sm:$0xff]  }
 0x29d   : > { %2381 = vmatprep.subr.bf16.mxu0 %v3241_v56  ;;  %v3283_v56 = vld [vmem:[#allocation4 + $0x294] ss:$8 sps:$4 sm:$0xff]  }
 0x2a0   : > { %2382 = vmatpush1.bf16.msra.mxu0 %v3239_v20  ;;  %v3281_v20 = vld [vmem:[#allocation4 + $0x290] ss:$8 sps:$4 sm:$0xff]  }
 0x2a1   : > { %2383 = vmatprep.subr.bf16.mxu0 %v3244_v21  ;;  %v3286_v21 = vld [vmem:[#allocation4 + $0x2a4] ss:$8 sps:$4 sm:$0xff]  }
 0x2a4   : > { %2384 = vmatpush1.bf16.msra.mxu0 %v3242_v22  ;;  %v3284_v22 = vld [vmem:[#allocation4 + $0x2a0] ss:$8 sps:$4 sm:$0xff]  }
 0x2a5   : > { %2385 = vmatprep.subr.bf16.mxu0 %v3247_v23  ;;  %v3289_v23 = vld [vmem:[#allocation4 + $0x2b4] ss:$8 sps:$4 sm:$0xff]  }
 0x2a8   : > { %v1353_v58 = vpop.f32.mrb[8].mxu1  ;;  %2386 = vmatpush1.bf16.msra.mxu0 %v3245_v26  ;;  %v3290_v26 = vld [vmem:[#allocation4 + $0x2c0] ss:$8 sps:$4 sm:$0xff]  }
 0x2a9   : > { %v1354_v32 = vadd.f32 %v1353_v58, %v597_v27  ;;  %v1355_v33 = vpop.f32.mrb[9].mxu1  ;;  %2387 = vmatprep.subr.bf16.mxu0 %v3250_v29  ;;  %v604_v29 = vsub.s32 4, %v3729_v54  ;;  %v3293_v58 = vld [vmem:[#allocation4 + $0x2d0] ss:$8 sps:$4 sm:$0xff]  }
 0x2aa   : > { %v1356_v34 = vadd.f32 %v1355_v33, %v601_v1  ;;  %v1357_v57 = vpop.f32.mrb[10].mxu1 }
 0x2ab   : > { %v1358_v10 = vadd.f32 %v1357_v57, %v597_v27  ;;  %v1359_v46 = vpop.f32.mrb[11].mxu1  ;;  %v1480_v36 = vmax.f32 %v1354_v32, 0.0  ;;  %v3298_v32 = vld [vmem:[#allocation4 + $0x2e4] ss:$8 sps:$4 sm:$0xff]  }
 0x2ac   : > { %v1360_v35 = vadd.f32 %v1359_v46, %v601_v1  ;;  %2388 = vmatpush1.bf16.msra.mxu0 %v3248_v31  ;;  %v1481_v39 = vmax.f32 %v1356_v34, 0.0  ;;  %v605_v31 = vrot.slane %v3785_v28, %v604_v29  ;;  %v3296_v34 = vld [vmem:[#allocation4 + $0x2e0] ss:$8 sps:$4 sm:$0xff]   ;;  %v3301_v46 = vld [vmem:[#allocation4 + $0x2f4] ss:$8 sps:$4 sm:$0xff]  }
 0x2ad   : > { %v1488_v37 = vmax.f32 %v1358_v10, 0.0  ;;  %2389 = vmatprep.subr.bf16.mxu0 %v3253_v2  ;;  %v3335_v29 = vld [vmem:[#allocation4 + $0x3b0] ss:$8 sps:$4 sm:$0xff]  }
 0x2ae   : > { %v1489_v42 = vmax.f32 %v1360_v35, 0.0 }
 0x2af   : > { %v1512_v44 = vpack.c.bf16 %v1488_v37, %v1480_v36 }
 0x2b0   : > { %v1513_v45 = vpack.c.bf16 %v1489_v42, %v1481_v39  ;;  %v1363_v47 = vpop.f32.mrb[12].mxu1  ;;  %2390 = vmatpush1.bf16.msra.mxu0 %v3251_v11  ;;  %v3299_v39 = vld [vmem:[#allocation4 + $0x2f0] ss:$8 sps:$4 sm:$0xff]  }
 0x2b1   : > { %v1364_v40 = vadd.f32 %v1363_v47, %v597_v27  ;;  %v1365_v41 = vpop.f32.mrb[13].mxu1  ;;  %2412 = vmatprep.subr.bf16.mxu0 %v3256_v38 }
 0x2b2   : > { %v1366_v49 = vadd.f32 %v1365_v41, %v601_v1  ;;  %v1367_v30 = vpop.f32.mrb[14].mxu1  ;;  %2391 = vmatprep.mubr.bf16.mxu0 %v1513_v45  ;;  %v3304_v45 = vld [vmem:[#allocation4 + $0x304] ss:$8 sps:$4 sm:$0xff]  }
 0x2b3   : > { %v1368_v50 = vadd.f32 %v1367_v30, %v597_v27  ;;  %v1369_v51 = vpop.f32.mrb[15].mxu1  ;;  %2392 = vmatmul.mubr.bf16.vlgmr.msra.gmra.mrb[0].mxu0 %v1512_v44  ;;  %v1496_v59 = vmax.f32 %v1364_v40, 0.0  ;;  %v3295_v27 = vld [vmem:[#allocation4 + $0x2d4] ss:$8 sps:$4 sm:$0xff]  }
 0x2b4   : > { %v1370_v52 = vadd.f32 %v1369_v51, %v601_v1  ;;  %2413 = vmatpush1.bf16.msra.mxu0 %v3254_v48  ;;  %v1497_v3 = vmax.f32 %v1366_v49, 0.0  ;;  %v608_v1 = vsub.s32 5, %v3729_v54  ;;  %v3302_v49 = vld [vmem:[#allocation4 + $0x300] ss:$8 sps:$4 sm:$0xff]   ;;  %v3307_v51 = vld [vmem:[#allocation4 + $0x314] ss:$8 sps:$4 sm:$0xff]  }
 0x2b5   : > { %v1504_v60 = vmax.f32 %v1368_v50, 0.0  ;;  %2414 = vmatprep.subr.bf16.mxu0 %v3259_v43 }
 0x2b6   : > { %v1505_v0 = vmax.f32 %v1370_v52, 0.0  ;;  %v609_v33 = vrot.slane %v3785_v28, %v608_v1  ;;  %v3340_v1 = vld [vmem:[#allocation4 + $0x3c4] ss:$8 sps:$4 sm:$0xff]  }
 0x2b7   : > { %v1520_v7 = vpack.c.bf16 %v1504_v60, %v1496_v59 }
 0x2b8   : > { %v1521_v4 = vpack.c.bf16 %v1505_v0, %v1497_v3  ;;  %2415 = vmatpush1.bf16.msra.mxu0 %v3257_v53  ;;  %v3305_v3 = vld [vmem:[#allocation4 + $0x310] ss:$8 sps:$4 sm:$0xff]  }
 0x2b9   : > { %2416 = vmatprep.subr.bf16.mxu0 %v3262_v61 }
 0x2ba   : > { %2401 = vmatprep.mubr.bf16.mxu0 %v1521_v4  ;;  %v3310_v4 = vld [vmem:[#allocation4 + $0x324] ss:$8 sps:$4 sm:$0xff]  }
 0x2bb   : > { %2402 = vmatmul.mubr.bf16.gmra.mrb[4].mxu0 %v1520_v7 }
 0x2bc   : > { %2417 = vmatpush1.bf16.msra.mxu0 %v3260_v12 }
 0x2bd   : > { %2418 = vmatprep.subr.bf16.mxu0 %v3265_v13 }
 0x2c0   : > { %2419 = vmatpush1.bf16.msra.mxu0 %v3263_v14 }
 0x2c1   : > { %2420 = vmatprep.subr.bf16.mxu0 %v3268_v15 }
 0x2c4   : > { %2421 = vmatpush1.bf16.msra.mxu0 %v3266_v5  ;;  %v3308_v5 = vld [vmem:[#allocation4 + $0x320] ss:$8 sps:$4 sm:$0xff]  }
 0x2c5   : > { %2422 = vmatprep.subr.bf16.mxu0 %v3271_v16  ;;  %v3313_v16 = vld [vmem:[#allocation4 + $0x334] ss:$8 sps:$4 sm:$0xff]  }
 0x2c8   : > { %2423 = vmatpush1.bf16.msra.mxu0 %v3269_v6  ;;  %v3311_v6 = vld [vmem:[#allocation4 + $0x330] ss:$8 sps:$4 sm:$0xff]  }
 0x2c9   : > { %2424 = vmatprep.subr.bf16.mxu0 %v3274_v8  ;;  %v3316_v8 = vld [vmem:[#allocation4 + $0x344] ss:$8 sps:$4 sm:$0xff]  }
 0x2cc   : > { %2425 = vmatpush1.bf16.msra.mxu0 %v3272_v17  ;;  %v3314_v17 = vld [vmem:[#allocation4 + $0x340] ss:$8 sps:$4 sm:$0xff]  }
 0x2cd   : > { %2426 = vmatprep.subr.bf16.mxu0 %v3277_v9  ;;  %v3319_v9 = vld [vmem:[#allocation4 + $0x354] ss:$8 sps:$4 sm:$0xff]  }
 0x2d0   : > { %2427 = vmatpush1.bf16.msra.mxu0 %v3275_v18  ;;  %v3317_v18 = vld [vmem:[#allocation4 + $0x350] ss:$8 sps:$4 sm:$0xff]  }
 0x2d1   : > { %2428 = vmatprep.subr.bf16.mxu0 %v3280_v55  ;;  %v3322_v55 = vld [vmem:[#allocation4 + $0x364] ss:$8 sps:$4 sm:$0xff]  }
 0x2d4   : > { %2429 = vmatpush1.bf16.msra.mxu0 %v3278_v19  ;;  %v3320_v19 = vld [vmem:[#allocation4 + $0x360] ss:$8 sps:$4 sm:$0xff]  }
 0x2d5   : > { %2430 = vmatprep.subr.bf16.mxu0 %v3283_v56  ;;  %v3325_v56 = vld [vmem:[#allocation4 + $0x374] ss:$8 sps:$4 sm:$0xff]  }
 0x2d8   : > { %2431 = vmatpush1.bf16.msra.mxu0 %v3281_v20  ;;  %v3323_v20 = vld [vmem:[#allocation4 + $0x370] ss:$8 sps:$4 sm:$0xff]  }
 0x2d9   : > { %2432 = vmatprep.subr.bf16.mxu0 %v3286_v21  ;;  %v3328_v21 = vld [vmem:[#allocation4 + $0x384] ss:$8 sps:$4 sm:$0xff]  }
 0x2dc   : > { %2433 = vmatpush1.bf16.msra.mxu0 %v3284_v22  ;;  %v3326_v22 = vld [vmem:[#allocation4 + $0x380] ss:$8 sps:$4 sm:$0xff]  }
 0x2dd   : > { %2434 = vmatprep.subr.bf16.mxu0 %v3289_v23  ;;  %v3331_v23 = vld [vmem:[#allocation4 + $0x394] ss:$8 sps:$4 sm:$0xff]  }
 0x2e0   : > { %2435 = vmatpush1.bf16.msra.mxu0 %v3287_v24  ;;  %v3329_v24 = vld [vmem:[#allocation4 + $0x390] ss:$8 sps:$4 sm:$0xff]  }
 0x2e1   : > { %2436 = vmatprep.subr.bf16.mxu0 %v3292_v25  ;;  %v3334_v25 = vld [vmem:[#allocation4 + $0x3a4] ss:$8 sps:$4 sm:$0xff]  }
 0x2e4   : > { %2437 = vmatpush1.bf16.msra.mxu0 %v3290_v26  ;;  %v3332_v26 = vld [vmem:[#allocation4 + $0x3a0] ss:$8 sps:$4 sm:$0xff]  }
 0x2e5   : > { %2438 = vmatprep.subr.bf16.mxu0 %v3295_v27  ;;  %v3337_v27 = vld [vmem:[#allocation4 + $0x3b4] ss:$8 sps:$4 sm:$0xff]  }
 0x2e8   : > { %v1406_v2 = vpop.f32.mrb[16].mxu1  ;;  %2439 = vmatpush1.bf16.msra.mxu0 %v3293_v58  ;;  %v3338_v58 = vld [vmem:[#allocation4 + $0x3c0] ss:$8 sps:$4 sm:$0xff]  }
 0x2e9   : > { %v1407_v57 = vadd.f32 %v1406_v2, %v605_v31  ;;  %v1408_v10 = vpop.f32.mrb[17].mxu1  ;;  %2440 = vmatprep.subr.bf16.mxu0 %v3298_v32  ;;  %v612_v32 = vsub.s32 6, %v3729_v54  ;;  %v3341_v2 = vld [vmem:[#allocation4 + $0x3d0] ss:$8 sps:$4 sm:$0xff]  }
 0x2ea   : > { %v1409_v35 = vadd.f32 %v1408_v10, %v609_v33  ;;  %v1410_v11 = vpop.f32.mrb[18].mxu1 }
 0x2eb   : > { %v1411_v36 = vadd.f32 %v1410_v11, %v605_v31  ;;  %v1412_v37 = vpop.f32.mrb[19].mxu1  ;;  %v1482_v42 = vmax.f32 %v1407_v57, 0.0  ;;  %v3346_v57 = vld [vmem:[#allocation4 + $0x3e4] ss:$8 sps:$4 sm:$0xff]  }
 0x2ec   : > { %v1413_v38 = vadd.f32 %v1412_v37, %v609_v33  ;;  %2441 = vmatpush1.bf16.msra.mxu0 %v3296_v34  ;;  %v1483_v47 = vmax.f32 %v1409_v35, 0.0  ;;  %v613_v34 = vrot.slane %v3785_v28, %v612_v32  ;;  %v3344_v35 = vld [vmem:[#allocation4 + $0x3e0] ss:$8 sps:$4 sm:$0xff]   ;;  %v3349_v37 = vld [vmem:[#allocation4 + $0x3f4] ss:$8 sps:$4 sm:$0xff]  }
 0x2ed   : > { %v1490_v44 = vmax.f32 %v1411_v36, 0.0  ;;  %2442 = vmatprep.subr.bf16.mxu0 %v3301_v46 }
 0x2ee   : > { %v1491_v48 = vmax.f32 %v1413_v38, 0.0 }
 0x2ef   : > { %v1514_v40 = vpack.c.bf16 %v1490_v44, %v1482_v42 }
 0x2f0   : > { %v1515_v41 = vpack.c.bf16 %v1491_v48, %v1483_v47  ;;  %v1416_v43 = vpop.f32.mrb[20].mxu1  ;;  %2443 = vmatpush1.bf16.msra.mxu0 %v3299_v39 }
 0x2f1   : > { %v1417_v30 = vadd.f32 %v1416_v43, %v605_v31  ;;  %v1418_v50 = vpop.f32.mrb[21].mxu1  ;;  %2465 = vmatprep.subr.bf16.mxu0 %v3304_v45  ;;  %v3347_v45 = vld [vmem:[#allocation4 + $0x3f0] ss:$8 sps:$4 sm:$0xff]  }
 0x2f2   : > { %v1419_v52 = vadd.f32 %v1418_v50, %v609_v33  ;;  %v1420_v53 = vpop.f32.mrb[22].mxu1  ;;  %2444 = vmatprep.mubr.bf16.mxu0 %v1515_v41 }
 0x2f3   : > { %v1421_v59 = vadd.f32 %v1420_v53, %v605_v31  ;;  %v1422_v60 = vpop.f32.mrb[23].mxu1  ;;  %2445 = vmatmul.mubr.bf16.vlgmr.msra.gmra.mrb[0].mxu0 %v1514_v40  ;;  %v1498_v0 = vmax.f32 %v1417_v30, 0.0  ;;  %v3343_v31 = vld [vmem:[#allocation4 + $0x3d4] ss:$8 sps:$4 sm:$0xff]  }
 0x2f4   : > { %v1423_v61 = vadd.f32 %v1422_v60, %v609_v33  ;;  %2466 = vmatpush1.bf16.msra.mxu0 %v3302_v49  ;;  %v1499_v12 = vmax.f32 %v1419_v52, 0.0  ;;  %v616_v33 = vsub.s32 7, %v3729_v54 }
 0x2f5   : > { %v1506_v7 = vmax.f32 %v1421_v59, 0.0  ;;  %2467 = vmatprep.subr.bf16.mxu0 %v3307_v51 }
 0x2f6   : > { %v1507_v13 = vmax.f32 %v1423_v61, 0.0  ;;  %v617_v10 = vrot.slane %v3785_v28, %v616_v33 }
 0x2f7   : > { %v1522_v14 = vpack.c.bf16 %v1506_v7, %v1498_v0 }
 0x2f8   : > { %v1523_v15 = vpack.c.bf16 %v1507_v13, %v1499_v12  ;;  %2468 = vmatpush1.bf16.msra.mxu0 %v3305_v3  ;;  %v1654_v13 = vld [vmem:[%s3890_s6] sm:$0x3] }
 0x2f9   : > { %2469 = vmatprep.subr.bf16.mxu0 %v3310_v4 }
 0x2fa   : > { %2454 = vmatprep.mubr.bf16.mxu0 %v1523_v15  ;;  %v1663_v15 = vrot.slane %v1654_v13, %v3732_v62 }
 0x2fb   : > { %2455 = vmatmul.mubr.bf16.gmra.mrb[4].mxu0 %v1522_v14  ;;  %v1659_v14 = vrot.slane %v1654_v13, %v3735_v63 }
 0x2fc   : > { %2470 = vmatpush1.bf16.msra.mxu0 %v3308_v5 }
 0x2fd   : > { %2471 = vmatprep.subr.bf16.mxu0 %v3313_v16 }
 0x300   : > { %2472 = vmatpush1.bf16.msra.mxu0 %v3311_v6 }
 0x301   : > { %2473 = vmatprep.subr.bf16.mxu0 %v3316_v8 }
 0x304   : > { %2474 = vmatpush1.bf16.msra.mxu0 %v3314_v17 }
 0x305   : > { %2475 = vmatprep.subr.bf16.mxu0 %v3319_v9 }
 0x308   : > { %2476 = vmatpush1.bf16.msra.mxu0 %v3317_v18 }
 0x309   : > { %2477 = vmatprep.subr.bf16.mxu0 %v3322_v55 }
 0x30c   : > { %2478 = vmatpush1.bf16.msra.mxu0 %v3320_v19 }
 0x30d   : > { %2479 = vmatprep.subr.bf16.mxu0 %v3325_v56 }
 0x310   : > { %2480 = vmatpush1.bf16.msra.mxu0 %v3323_v20 }
 0x311   : > { %2481 = vmatprep.subr.bf16.mxu0 %v3328_v21 }
 0x314   : > { %2482 = vmatpush1.bf16.msra.mxu0 %v3326_v22 }
 0x315   : > { %2483 = vmatprep.subr.bf16.mxu0 %v3331_v23 }
 0x318   : > { %2484 = vmatpush1.bf16.msra.mxu0 %v3329_v24 }
 0x319   : > { %2485 = vmatprep.subr.bf16.mxu0 %v3334_v25 }
 0x31c   : > { %2486 = vmatpush1.bf16.msra.mxu0 %v3332_v26 }
 0x31d   : > { %2487 = vmatprep.subr.bf16.mxu0 %v3337_v27 }
 0x320   : > { %2488 = vmatpush1.bf16.msra.mxu0 %v3335_v29 }
 0x321   : > { %2489 = vmatprep.subr.bf16.mxu0 %v3340_v1 }
 0x324   : > { %2490 = vmatpush1.bf16.msra.mxu0 %v3338_v58 }
 0x325   : > { %2491 = vmatprep.subr.bf16.mxu0 %v3343_v31 }
 0x328   : > { %v1459_v46 = vpop.f32.mrb[24].mxu1  ;;  %2492 = vmatpush1.bf16.msra.mxu0 %v3341_v2 }
 0x329   : > { %v1460_v11 = vadd.f32 %v1459_v46, %v613_v34  ;;  %v1461_v36 = vpop.f32.mrb[25].mxu1  ;;  %2493 = vmatprep.subr.bf16.mxu0 %v3346_v57 }
 0x32a   : > { %v1462_v38 = vadd.f32 %v1461_v36, %v617_v10  ;;  %v1463_v39 = vpop.f32.mrb[26].mxu1 }
 0x32b   : > { %v1464_v42 = vadd.f32 %v1463_v39, %v613_v34  ;;  %v1465_v44 = vpop.f32.mrb[27].mxu1  ;;  %v1484_v47 = vmax.f32 %v1460_v11, 0.0 }
 0x32c   : > { %v1466_v54 = vadd.f32 %v1465_v44, %v617_v10  ;;  %2494 = vmatpush1.bf16.msra.mxu0 %v3344_v35  ;;  %v1485_v40 = vmax.f32 %v1462_v38, 0.0 }
 0x32d   : > { %v1492_v48 = vmax.f32 %v1464_v42, 0.0  ;;  %2495 = vmatprep.subr.bf16.mxu0 %v3349_v37 }
 0x32e   : > { %v1493_v41 = vmax.f32 %v1466_v54, 0.0 }
 0x32f   : > { %v1516_v28 = vpack.c.bf16 %v1492_v48, %v1484_v47 }
 0x330   : > { %v1517_v43 = vpack.c.bf16 %v1493_v41, %v1485_v40  ;;  %v1469_v49 = vpop.f32.mrb[28].mxu1  ;;  %2496 = vmatpush1.bf16.msra.mxu0 %v3347_v45 }
 0x331   : > { %v1470_v30 = vadd.f32 %v1469_v49, %v613_v34  ;;  %v1471_v50 = vpop.f32.mrb[29].mxu1 }
 0x332   : > { %v1472_v51 = vadd.f32 %v1471_v50, %v617_v10  ;;  %v1473_v52 = vpop.f32.mrb[30].mxu1  ;;  %2497 = vmatprep.mubr.bf16.mxu0 %v1517_v43 }
 0x333   : > { %v1474_v53 = vadd.f32 %v1473_v52, %v613_v34  ;;  %v1475_v59 = vpop.f32.mrb[31].mxu1  ;;  %2498 = vmatmul.mubr.bf16.vlgmr.msra.gmra.mrb[0].mxu0 %v1516_v28  ;;  %v1500_v61 = vmax.f32 %v1470_v30, 0.0 }
 0x334   : > { %v1476_v60 = vadd.f32 %v1475_v59, %v617_v10  ;;  %v1501_v0 = vmax.f32 %v1472_v51, 0.0 }
 0x335   : > { %v1508_v3 = vmax.f32 %v1474_v53, 0.0 }
 0x336   : > { %v1509_v7 = vmax.f32 %v1476_v60, 0.0 }
 0x337   : > { %v1524_v4 = vpack.c.bf16 %v1508_v3, %v1500_v61 }
 0x338   : > { %v1525_v12 = vpack.c.bf16 %v1509_v7, %v1501_v0 }
 0x33a   : > { %2507 = vmatprep.mubr.bf16.mxu0 %v1525_v12 }
 0x33b   : > { %2508 = vmatmul.mubr.bf16.gmra.mrb[4].mxu0 %v1524_v4 }
 0x406   : > { %v2499_v5 = vpop.f32.mrb[0].mxu0 }
 0x407   : > { %v3013_v16 = vadd.f32 %v2499_v5, %v1659_v14  ;;  %v2501_v6 = vpop.f32.mrb[1].mxu0 }
 0x408   : > { %v3014_v8 = vadd.f32 %v2501_v6, %v1663_v15  ;;  %v2503_v17 = vpop.f32.mrb[2].mxu0 }
 0x409   : > { %2518 = vst [vmem:[%s3809_s29] sm:$0xff] %v3013_v16  ;;  %v3015_v9 = vadd.f32 %v2503_v17, %v1659_v14  ;;  %v2505_v18 = vpop.f32.mrb[3].mxu0 }
 0x40a   : > { %2519 = vst [vmem:[%s3809_s29 + $0x8] sm:$0xff] %v3014_v8  ;;  %v3016_v62 = vadd.f32 %v2505_v18, %v1663_v15 }
 0x40b   : > { %2520 = vst [vmem:[%s3809_s29 + $0x10] sm:$0xff] %v3015_v9 }
 0x40c   : > { %2521 = vst [vmem:[%s3809_s29 + $0x18] sm:$0xff] %v3016_v62 }
 0x40e   : > { %v2509_v63 = vpop.f32.mrb[4].mxu0  ;;  %2532 = sbr.rel (!%p3902_p12) target bundleno = 1094 (0x446), region = 60 }
 0x40f   : > { %v3017_v55 = vadd.f32 %v2509_v63, %v1659_v14  ;;  %v2511_v19 = vpop.f32.mrb[5].mxu0 }
 0x410   : > { %v3018_v56 = vadd.f32 %v2511_v19, %v1663_v15  ;;  %v2513_v20 = vpop.f32.mrb[6].mxu0 }
 0x411   : > { %2522 = vst [vmem:[%s3809_s29 + $0x20] sm:$0xff] %v3017_v55  ;;  %v3019_v21 = vadd.f32 %v2513_v20, %v1659_v14  ;;  %v2515_v22 = vpop.f32.mrb[7].mxu0 }
 0x412   : > { %2523 = vst [vmem:[%s3809_s29 + $0x28] sm:$0xff] %v3018_v56  ;;  %v3020_v23 = vadd.f32 %v2515_v22, %v1663_v15 }
 0x413   : > { %2524 = vst [vmem:[%s3809_s29 + $0x30] sm:$0xff] %v3019_v21 }
 0x414   : > { %2525 = vst [vmem:[%s3809_s29 + $0x38] sm:$0xff] %v3020_v23 }
 0x415   : > { %s3910_s24 = smov (!%p2535_p13, %s2534_s24), 4 }
 0x416   : > { %s3008_s14 = sshll.u32 %s3910_s24, 8 }
 0x417   : > { %p2995_p0 = scmp.eq.s32.totalorder %s3008_s14, 0 }
 0x418   : > { %s3832_s16 = sshrl.u32 (!%p2995_p0), %s3910_s24, 2 }
 0x419   : > { %2545 = sbr.rel (%p2995_p0) target bundleno = 1094 (0x446), region = 64  ;;  %p2996_p1 = scmp.le.s32.totalorder (!%p2995_p0), %s3832_s16, 0 }
 0x420   : > { %2658 = sbr.rel (%p2996_p1) target bundleno = 1073 (0x431), region = 113  ;;  %s3903_s27 = smov (!%p2996_p1), %s3826_s11 }
 0x421   : > { %s3904_s9 = smov (!%p2996_p1), %s3809_s29  ;;  %s3841_s13 = smov (!%p2996_p1), 0  }
 0x422   : > { %s3843_s17 = smov (!%p2996_p1), 0  }
 0x427 LB: >> { %v2558_v24 = vld [vmem:[%s3484_s9] sm:$0xff]  ;;  %v2560_v25 = vld [vmem:[%s3484_s9 + $0x10] sm:$0xff]  ;;  %s2574_s18 = sadd.s32 1, %s3488_s13  ;;  %v2566_v29 = vld [vmem:[%s3484_s9 + $0x8] sm:$0xff]  ;;  %s2552_s17 = sadd.s32 1, %s3492_s17   ;;  %s3492_s17 = sphi %s3843_s17, %s2552_s17   ;;  %s3488_s13 = sphi %s3841_s13, %s3905_s13   ;;  %s3484_s9 = sphi %s3904_s9, %s2579_s9   ;;  %s3480_s27 = sphi %s3903_s27, %s2580_s27  }
 0x428   : >> { %v2562_v26 = vld [vmem:[%s3484_s9 + $0x20] sm:$0xff]  ;;  %2559 = vst [vmem:[%s3480_s27] sm:$0xff] %v2558_v24  ;;  %2561 = vst [vmem:[%s3480_s27 + $0x10] sm:$0xff] %v2560_v25  ;;  %v2564_v27 = vld [vmem:[%s3484_s9 + $0x30] sm:$0xff]  ;;  %p2575_p2 = scmp.ge.s32.totalorder %s2574_s18, %s3832_s16  ;;  %p2551_p3 = scmp.ge.s32.totalorder %s2552_s17, %s3832_s16 }
 0x429   : >> { %2563 = vst [vmem:[%s3480_s27 + $0x20] sm:$0xff] %v2562_v26  ;;  %v2568_v1 = vld [vmem:[%s3484_s9 + $0x18] sm:$0xff]  ;;  %2565 = vst [vmem:[%s3480_s27 + $0x30] sm:$0xff] %v2564_v27  ;;  %v2570_v58 = vld [vmem:[%s3484_s9 + $0x28] sm:$0xff] }
 0x42a   : >> { %2567 = vst [vmem:[%s3480_s27 + $0x8] sm:$0xff] %v2566_v29  ;;  %2569 = vst [vmem:[%s3480_s27 + $0x18] sm:$0xff] %v2568_v1  ;;  %v2572_v31 = vld [vmem:[%s3484_s9 + $0x38] sm:$0xff]  ;;  %s3912_s18 = smov (%p2575_p2, %s2574_s18), 0  ;;  %2554 = sbr.rel (!%p2551_p3) target bundleno = 1063 (0x427), region = 119 }
 0x42b   : >> { %2571 = vst [vmem:[%s3480_s27 + $0x28] sm:$0xff] %v2570_v58  ;;  %2573 = vst [vmem:[%s3480_s27 + $0x38] sm:$0xff] %v2572_v31  ;;  %s2997_s19 = sshll.u32 %s3912_s18, 6  ;;  %s3905_s13 = smov %s3912_s18 }
 0x42c   : >> { %s2579_s9 = scalar_lea.vmem %s3809_s29, %s2997_s19 [#allocation6]   ;;  %s2580_s27 = scalar_lea.vmem %s3826_s11, %s2997_s19  }
 0x431 PF: > { %s3862_s20 = sand.u32 3, %s3910_s24   ;;  %s3011_s21 = sshll.u32 %s3832_s16, 6 }
 0x432   : > { %s3866_s12 = scalar_lea.vmem %s3809_s29, %s3011_s21 [#allocation6]   ;;  %s2587_s22 = scalar_lea.vmem %s3826_s11, %s3011_s21  }
 0x433   : > { %p3002_p5 = scmp.le.s32.totalorder %s3862_s20, 0 }
 0x434   : > { %s3494_s23 = smov (!%p3002_p5), %s2587_s22   ;;  %s3498_s26 = smov (!%p3002_p5), %s3866_s12  }
 0x435   : > { %2672 = sbr.rel (%p3002_p5) target bundleno = 1094 (0x446), region = 124  ;;  %s3502_s10 = smov (!%p3002_p5), 0  }
 0x436   : > { %s3506_s15 = smov (!%p3002_p5), 0  }
 0x43c LB: >> { %v2597_v32 = vld [vmem:[%s3500_s26] sm:$0xff]  ;;  %v2599_v33 = vld [vmem:[%s3500_s26 + $0x8] sm:$0xff]  ;;  %s2601_s29 = sadd.s32 1, %s3504_s10  ;;  %s2591_s15 = sadd.s32 1, %s3508_s15   ;;  %s3508_s15 = sphi %s3506_s15, %s2591_s15   ;;  %s3504_s10 = sphi %s3502_s10, %s3503_s10   ;;  %s3500_s26 = sphi %s3498_s26, %s2606_s26   ;;  %s3496_s23 = sphi %s3494_s23, %s2607_s23  }
 0x43d   : >> { %2598 = vst [vmem:[%s3496_s23] sm:$0xff] %v2597_v32  ;;  %2600 = vst [vmem:[%s3496_s23 + $0x8] sm:$0xff] %v2599_v33  ;;  %p2602_p8 = scmp.ge.s32.totalorder %s2601_s29, %s3862_s20  ;;  %p2590_p10 = scmp.ge.s32.totalorder %s2591_s15, %s3862_s20 }
 0x43f   : >> { %s3914_s29 = smov (%p2602_p8, %s2601_s29), 0  ;;  %2593 = sbr.rel (!%p2590_p10) target bundleno = 1084 (0x43c), region = 130 }
 0x440   : >> { %s3003_s24 = sshll.u32 %s3914_s29, 4  ;;  %s3503_s10 = smov %s3914_s29  }
 0x441   : >> { %s2606_s26 = scalar_lea.vmem %s3866_s12, %s3003_s24 [#allocation6]   ;;  %s2607_s23 = scalar_lea.vmem %s2587_s22, %s3003_s24  }
 0x446 PF: > { %p16_p11 = scmp.ge.s32.totalorder %s3571_s28, 4   ;;  %s3906_s24 = smov %s3472_s25 }
 0x447   : > { %s3907_s25 = smov %s3579_s8  ;;  %s3908_s26 = smov %s3571_s28 }
 0x448   :  { %18 = sbr.rel (!%p16_p11) target bundleno = 3 (0x3), region = 141 }
 0x44f   :  { %2623 = vsyncpa [#allocation3], 1 }
 0x450   :  { %2625 = vsyncpa [#allocation3 + $0x1], 1 }
 0x451   :  { %2626 = vsyncpa [#allocation5], 1 }

</bundles_post_ra>
